<compile_context>
chip_gen: v7x
topology: tpu7x:2x2x1
jax: 0.10.0
libtpu: 0.0.40
codegen_flags: <defaults>
</compile_context>

<pallas_src>
import functools
import numpy as np
import jax
import jax.numpy as jnp
from jax import lax
from jax.experimental import pallas as pl
from jax.experimental.pallas import tpu as pltpu

# -------------------- VAE_Common constants --------------------
STRIDES = [3, 3]
KERNELS = [5, 5]
PADDINGS = [3, 3]
COLOR_CHANNELS = [8, 4]
OUTPUT_PADDINGS = [1, 1]

LANE = 128
SUBLANE = 8
TM_MAX = 512          # big-batch row tile (review: 512-1024; capped at 512 for v5e)


def _round_up(v, m):
    return (v + m - 1) // m * m


def _deconv_out(h, k, s, p, op):
    return (h - 1) * s - 2 * p + k + op


# -------------------- host-side lowering: ConvTranspose2d -> dense matrix --------------------
def _convtranspose_as_matrix(w, H, W, stride, padding, output_padding):
    """w: (Ci, Co, k, k) float32 numpy (torch ConvTranspose2d layout).

    Returns M of shape (Ci*H*W, Co*OH*OW) such that flat_out = flat_in @ M
    reproduces ConvTranspose2d (bias excluded); flat layouts are channel-major
    (ci*H*W + i*W + j) / (co*OH*OW + oh*OW + ow), matching torch .view semantics.
    """
    Ci, Co, k, _ = w.shape
    OH = _deconv_out(H, k, stride, padding, output_padding)
    OW = _deconv_out(W, k, stride, padding, output_padding)
    M = np.zeros((Ci * H * W, Co * OH * OW), np.float32)
    co_idx = np.arange(Co)
    for ci in range(Ci):
        for i in range(H):
            for j in range(W):
                row = (ci * H + i) * W + j
                for kh in range(k):
                    oh = i * stride - padding + kh
                    if not (0 <= oh < OH):
                        continue
                    for kw in range(k):
                        ow = j * stride - padding + kw
                        if not (0 <= ow < OW):
                            continue
                        cols = (co_idx * OH + oh) * OW + ow
                        M[row, cols] = w[ci, :, kh, kw]
    return M, OH, OW


# -------------------- parameter construction --------------------
def init_decoder_params(key, color_channel, decoder_input_size, size_before_flatten):
    c_last = COLOR_CHANNELS[-1]   # convt1 in-channels  (4)
    c_prev = COLOR_CHANNELS[-2]   # convt1 out-channels (8)
    sh, sw = size_before_flatten
    n_mid = c_last * sh * sw

    k1, p1, s1, op1 = KERNELS[-1], PADDINGS[-1], STRIDES[-1], OUTPUT_PADDINGS[-1]
    k2, p2, s2, op2 = KERNELS[-2], PADDINGS[-2], STRIDES[-2], OUTPUT_PADDINGS[-2]

    keys = jax.random.split(key, 6)

    def u(k, shape, fan_in):
        b = 1.0 / np.sqrt(fan_in)
        return np.asarray(jax.random.uniform(k, shape, jnp.float32, -b, b))

    # lin1: Linear(decoder_input_size -> n_mid), torch weight layout (out, in)
    lin1_w = u(keys[0], (n_mid, decoder_input_size), decoder_input_size)
    lin1_b = u(keys[1], (n_mid,), decoder_input_size)
    # ConvTranspose2d weights, torch layout (Ci, Co, k, k); fan_in = Co*k*k
    convt1_w = u(keys[2], (c_last, c_prev, k1, k1), c_prev * k1 * k1)
    convt1_b = u(keys[3], (c_prev,), c_prev * k1 * k1)
    convt2_w = u(keys[4], (c_prev, color_channel, k2, k2), color_channel * k2 * k2)
    convt2_b = u(keys[5], (color_channel,), color_channel * k2 * k2)

    # Lower both transposed convolutions to dense matrices (done once, host side).
    m1, oh1, ow1 = _convtranspose_as_matrix(convt1_w, sh, sw, s1, p1, op1)
    m2, oh2, ow2 = _convtranspose_as_matrix(convt2_w, oh1, ow1, s2, p2, op2)

    d_in = decoder_input_size
    k0p = _round_up(d_in, LANE)                        # 20  -> 128 (weight rows only)
    n1p = _round_up(n_mid, LANE)                       # 36  -> 128
    n2p = _round_up(c_prev * oh1 * ow1, LANE)          # 288 -> 384
    n3p = _round_up(color_channel * oh2 * ow2, LANE)   # 900 -> 1024

    def pad2(a, r, c):
        out = np.zeros((r, c), np.float32)
        out[: a.shape[0], : a.shape[1]] = a
        return out

    def pad_bias(b, c):
        out = np.zeros((1, c), np.float32)
        out[0, : b.shape[0]] = b
        return out

    params = {
        # bf16 MXU operands (halves weight DMA bytes); biases stay f32.
        "w1": jnp.asarray(pad2(lin1_w.T, k0p, n1p), jnp.bfloat16),
        "w2": jnp.asarray(pad2(m1, n1p, n2p), jnp.bfloat16),
        "w3": jnp.asarray(pad2(m2, n2p, n3p), jnp.bfloat16),
        "b1": jnp.asarray(pad_bias(lin1_b, n1p)),
        "b2": jnp.asarray(pad_bias(np.repeat(convt1_b, oh1 * ow1), n2p)),
        "b3": jnp.asarray(pad_bias(np.repeat(convt2_b, oh2 * ow2), n3p)),
    }
    raw = {  # torch-layout params for the pure-JAX reference
        "lin1_w": jnp.asarray(lin1_w), "lin1_b": jnp.asarray(lin1_b),
        "convt1_w": jnp.asarray(convt1_w), "convt1_b": jnp.asarray(convt1_b),
        "convt2_w": jnp.asarray(convt2_w), "convt2_b": jnp.asarray(convt2_b),
    }
    meta = dict(
        d_in=d_in, n_mid=n_mid, c_last=c_last, c_prev=c_prev,
        sh=sh, sw=sw, oh1=oh1, ow1=ow1, oh2=oh2, ow2=ow2,
        color_channel=color_channel,
        k0p=k0p, n1p=n1p, n2p=n2p, n3p=n3p,
        conv1=(k1, s1, p1, op1), conv2=(k2, s2, p2, op2),
    )
    return params, raw, meta


# -------------------- fused Pallas kernel: whole decoder in one call --------------------
def _decoder_fused_kernel(x_ref, w1_ref, b1_ref, w2_ref, b2_ref, w3_ref, b3_ref,
                          o_ref, xpad_ref, *, d_in):
    # K-pad x inside the kernel: zero the (tm, 128) bf16 staging buffer and write
    # the real d_in columns (masked store).  Avoids a host-side 6.4x zero-inflated
    # HBM copy of the input; cost is a tiny VMEM store/load per step.
    xpad_ref[...] = jnp.zeros_like(xpad_ref)
    xpad_ref[:, :d_in] = x_ref[...].astype(xpad_ref.dtype)

    # lin1 + ReLU (bf16 MXU inputs, f32 accumulate, f32 elementwise)
    h = jnp.dot(xpad_ref[...], w1_ref[...], preferred_element_type=jnp.float32)
    h = jnp.maximum(h + b1_ref[...], 0.0)
    # convt1 as dense matmul + ReLU   (intermediate stays in vregs/VMEM)
    h = jnp.dot(h.astype(w2_ref.dtype), w2_ref[...], preferred_element_type=jnp.float32)
    h = jnp.maximum(h + b2_ref[...], 0.0)
    # convt2 as dense matmul + sigmoid (exp on EUP, approx reciprocal on EUP slot)
    h = jnp.dot(h.astype(w3_ref.dtype), w3_ref[...], preferred_element_type=jnp.float32)
    p = jnp.exp(-(h + b3_ref[...]))
    o_ref[...] = pl.reciprocal(1.0 + p, approx=True).astype(o_ref.dtype)


def decoder_forward(params, meta, x):
    """x: (N, decoder_input_size) f32 -> (N, color_channel, OH2, OW2) f32 (NCHW)."""
    n = x.shape[0]
    d_in = meta["d_in"]
    k0p, n1p, n2p, n3p = meta["k0p"], meta["n1p"], meta["n2p"], meta["n3p"]

    # M-tile selection:
    #   * small batch (<=256): one 8-aligned block, minimal padding, single grid step;
    #   * larger batch: >=2 grid steps (so the "parallel" axis can shard across both
    #     v7x TensorCores), tiles capped at TM_MAX=512 rows (amortizes the ~0.35us
    #     per-step overhead, stays far under VMEM on every generation).
    if n <= 256:
        tm = _round_up(max(n, SUBLANE), SUBLANE)
        m_pad = tm
    else:
        tm = min(TM_MAX, _round_up((n + 1) // 2, SUBLANE))
        m_pad = _round_up(n, tm)

    # Only pad rows when the batch isn't a tile multiple; K stays un-padded (20).
    x_in = x if m_pad == n else jnp.zeros((m_pad, d_in), x.dtype).at[:n].set(x)

    flops = 2 * m_pad * (k0p * n1p + n1p * n2p + n2p * n3p)
    bytes_accessed = (
        m_pad * d_in * 4
        + (params["w1"].size + params["w2"].size + params["w3"].size) * 2
        + (params["b1"].size + params["b2"].size + params["b3"].size) * 4
        + m_pad * n3p * 2   # bf16 output writeback
    )

    out = pl.pallas_call(
        functools.partial(_decoder_fused_kernel, d_in=d_in),
        # bf16 output: the f32 writeback was the dominant HBM stream (kernel was
        # HBM-write-bound on v6e/v7x); sigmoid outputs in [0,1] fit bf16 easily.
        out_shape=jax.ShapeDtypeStruct((m_pad, n3p), jnp.bfloat16),
        grid=(m_pad // tm,),
        in_specs=[
            pl.BlockSpec((tm, d_in), lambda i: (i, 0)),   # x tile, un-padded K
            pl.BlockSpec((k0p, n1p), lambda i: (0, 0)),   # weights: constant block index
            pl.BlockSpec((1, n1p), lambda i: (0, 0)),     #   -> fetched once, VMEM-resident
            pl.BlockSpec((n1p, n2p), lambda i: (0, 0)),
            pl.BlockSpec((1, n2p), lambda i: (0, 0)),
            pl.BlockSpec((n2p, n3p), lambda i: (0, 0)),
            pl.BlockSpec((1, n3p), lambda i: (0, 0)),
        ],
        out_specs=pl.BlockSpec((tm, n3p), lambda i: (i, 0)),
        scratch_shapes=[pltpu.VMEM((tm, k0p), jnp.bfloat16)],   # K-padded x staging
        compiler_params=pltpu.CompilerParams(
            dimension_semantics=("parallel",),
            vmem_limit_bytes=32 * 1024 * 1024,
        ),
        cost_estimate=pl.CostEstimate(
            flops=flops, transcendentals=m_pad * n3p, bytes_accessed=bytes_accessed),
    )(x_in, params["w1"], params["b1"], params["w2"], params["b2"],
      params["w3"], params["b3"])

    co, oh2, ow2 = meta["color_channel"], meta["oh2"], meta["ow2"]
    out = out[:n, : co * oh2 * ow2].astype(jnp.float32)
    return out.reshape(n, co, oh2, ow2)   # NCHW, like torch


# -------------------- pure-JAX reference (for correctness check) --------------------
def _convtranspose2d_ref(x, w, b, stride, padding, output_padding):
    k = w.shape[2]
    w_eq = jnp.flip(w, (2, 3)).transpose(1, 0, 2, 3)      # (Co, Ci, k, k)
    pad_lo = k - 1 - padding
    pad_hi = k - 1 - padding + output_padding
    y = lax.conv_general_dilated(
        x, w_eq, window_strides=(1, 1),
        padding=[(pad_lo, pad_hi), (pad_lo, pad_hi)],
        lhs_dilation=(stride, stride),
        dimension_numbers=("NCHW", "OIHW", "NCHW"),
        precision=lax.Precision.HIGHEST)
    return y + b.reshape(1, -1, 1, 1)


def decoder_forward_ref(raw, meta, x):
    h = jnp.dot(x, raw["lin1_w"].T, precision=lax.Precision.HIGHEST) + raw["lin1_b"]
    h = jnp.maximum(h, 0.0)
    h = h.reshape(-1, meta["c_last"], meta["sh"], meta["sw"])
    k1, s1, p1, op1 = meta["conv1"]
    k2, s2, p2, op2 = meta["conv2"]
    h = jnp.maximum(_convtranspose2d_ref(h, raw["convt1_w"], raw["convt1_b"], s1, p1, op1), 0.0)
    h = _convtranspose2d_ref(h, raw["convt2_w"], raw["convt2_b"], s2, p2, op2)
    return jax.nn.sigmoid(h)


# -------------------- main --------------------
if __name__ == "__main__":
    color_channel = 4            # final reconstruction channels
    decoder_input_size = 20      # latent dimension fed to the decoder
    size_before_flatten = (3, 3) # what the paired Encoder produces for a 16x16 input
    batch = 2

    key = jax.random.PRNGKey(0)
    pkey, xkey = jax.random.split(key)
    params, raw, meta = init_decoder_params(
        pkey, color_channel, decoder_input_size, size_before_flatten)

    x = jax.random.uniform(xkey, (batch, decoder_input_size), jnp.float32)

    fwd = jax.jit(functools.partial(decoder_forward, params, meta))
    out = fwd(x)
    jax.block_until_ready(out)

    assert out.shape == (batch, color_channel, 15, 15), out.shape
    assert bool(jnp.all(jnp.isfinite(out)))

    ref = decoder_forward_ref(raw, meta, x)
    err = float(jnp.max(jnp.abs(out - ref)))
    assert err < 2e-2, f"max abs err vs reference: {err}"

    print("KERNEL_OK")
</pallas_src>

<mosaic_0001>
module attributes {stable_mosaic.version = 11 : i64} {
  func.func @_decoder_fused_kernel(%arg0: i32, %arg1: memref<8x20xf32, #tpu.memory_space<vmem>>, %arg2: memref<128x128xbf16, #tpu.memory_space<vmem>>, %arg3: memref<1x128xf32, #tpu.memory_space<vmem>>, %arg4: memref<128x384xbf16, #tpu.memory_space<vmem>>, %arg5: memref<1x384xf32, #tpu.memory_space<vmem>>, %arg6: memref<384x1024xbf16, #tpu.memory_space<vmem>>, %arg7: memref<1x1024xf32, #tpu.memory_space<vmem>>, %arg8: memref<8x1024xbf16, #tpu.memory_space<vmem>>, %arg9: memref<8x128xbf16, #tpu.memory_space<vmem>>) attributes {dimension_semantics = [#tpu.dimension_semantics<parallel>], iteration_bounds = array<i64: 1>, scalar_prefetch = 0 : i64, scratch_operands = 1 : i64, tpu.core_type = #tpu.core_type<tc>, window_params = [{transform_indices = @transform_0, window_bounds = array<i64: 8, 20>}, {pipeline_mode = #tpu.pipeline_mode<synchronous>, transform_indices = @transform_1, window_bounds = array<i64: 128, 128>}, {pipeline_mode = #tpu.pipeline_mode<synchronous>, transform_indices = @transform_2, window_bounds = array<i64: 1, 128>}, {pipeline_mode = #tpu.pipeline_mode<synchronous>, transform_indices = @transform_3, window_bounds = array<i64: 128, 384>}, {pipeline_mode = #tpu.pipeline_mode<synchronous>, transform_indices = @transform_4, window_bounds = array<i64: 1, 384>}, {pipeline_mode = #tpu.pipeline_mode<synchronous>, transform_indices = @transform_5, window_bounds = array<i64: 384, 1024>}, {pipeline_mode = #tpu.pipeline_mode<synchronous>, transform_indices = @transform_6, window_bounds = array<i64: 1, 1024>}, {transform_indices = @transform_7, window_bounds = array<i64: 8, 1024>}]} {
    %cst = arith.constant 0.000000e+00 : bf16
    %0 = vector.broadcast %cst : bf16 to vector<8x128xbf16>
    %c0 = arith.constant 0 : index
    %c0_0 = arith.constant 0 : index
    %1 = vector.load %arg9[%c0, %c0_0] : memref<8x128xbf16, #tpu.memory_space<vmem>>, vector<8x128xbf16>
    tpu.vector_store %arg9[%c0, %c0_0], %0 {strides = array<i32>} : memref<8x128xbf16, #tpu.memory_space<vmem>>, vector<8x128xbf16>,
    %c0_1 = arith.constant 0 : index
    %c0_2 = arith.constant 0 : index
    %2 = vector.load %arg1[%c0_1, %c0_2] : memref<8x20xf32, #tpu.memory_space<vmem>>, vector<8x20xf32>
    %3 = arith.truncf %2 : vector<8x20xf32> to vector<8x20xbf16>
    %c0_3 = arith.constant 0 : index
    %c0_4 = arith.constant 0 : index
    %4 = vector.load %arg9[%c0_3, %c0_4] : memref<8x128xbf16, #tpu.memory_space<vmem>>, vector<8x20xbf16>
    tpu.vector_store %arg9[%c0_3, %c0_4], %3 {strides = array<i32>} : memref<8x128xbf16, #tpu.memory_space<vmem>>, vector<8x20xbf16>,
    %c0_5 = arith.constant 0 : index
    %c0_6 = arith.constant 0 : index
    %5 = vector.load %arg9[%c0_5, %c0_6] : memref<8x128xbf16, #tpu.memory_space<vmem>>, vector<8x128xbf16>
    %c0_7 = arith.constant 0 : index
    %c0_8 = arith.constant 0 : index
    %6 = vector.load %arg2[%c0_7, %c0_8] : memref<128x128xbf16, #tpu.memory_space<vmem>>, vector<128x128xbf16>
    %cst_9 = arith.constant dense<0.000000e+00> : vector<8x128xf32>
    %7 = tpu.matmul %5, %6, %cst_9 {dimension_numbers = #tpu.dot_dimension_numbers<[1], [0], [0], [1], [0, 0, 1, 1], [], []>} : vector<8x128xbf16>, vector<128x128xbf16>, vector<8x128xf32> -> vector<8x128xf32>
    %c0_10 = arith.constant 0 : index
    %c0_11 = arith.constant 0 : index
    %8 = vector.load %arg3[%c0_10, %c0_11] : memref<1x128xf32, #tpu.memory_space<vmem>>, vector<1x128xf32>
    %9 = vector.broadcast %8 : vector<1x128xf32> to vector<8x128xf32>
    %10 = arith.addf %7, %9 : vector<8x128xf32>
    %cst_12 = arith.constant 0.000000e+00 : f32
    %11 = vector.broadcast %cst_12 : f32 to vector<8x128xf32>
    %12 = arith.maximumf %10, %11 : vector<8x128xf32>
    %13 = arith.truncf %12 : vector<8x128xf32> to vector<8x128xbf16>
    %c0_13 = arith.constant 0 : index
    %c0_14 = arith.constant 0 : index
    %14 = vector.load %arg4[%c0_13, %c0_14] : memref<128x384xbf16, #tpu.memory_space<vmem>>, vector<128x384xbf16>
    %cst_15 = arith.constant dense<0.000000e+00> : vector<8x384xf32>
    %15 = tpu.matmul %13, %14, %cst_15 {dimension_numbers = #tpu.dot_dimension_numbers<[1], [0], [0], [1], [0, 0, 1, 1], [], []>} : vector<8x128xbf16>, vector<128x384xbf16>, vector<8x384xf32> -> vector<8x384xf32>
    %c0_16 = arith.constant 0 : index
    %c0_17 = arith.constant 0 : index
    %16 = vector.load %arg5[%c0_16, %c0_17] : memref<1x384xf32, #tpu.memory_space<vmem>>, vector<1x384xf32>
    %17 = vector.broadcast %16 : vector<1x384xf32> to vector<8x384xf32>
    %18 = arith.addf %15, %17 : vector<8x384xf32>
    %cst_18 = arith.constant 0.000000e+00 : f32
    %19 = vector.broadcast %cst_18 : f32 to vector<8x384xf32>
    %20 = arith.maximumf %18, %19 : vector<8x384xf32>
    %21 = arith.truncf %20 : vector<8x384xf32> to vector<8x384xbf16>
    %c0_19 = arith.constant 0 : index
    %c0_20 = arith.constant 0 : index
    %22 = vector.load %arg6[%c0_19, %c0_20] : memref<384x1024xbf16, #tpu.memory_space<vmem>>, vector<384x1024xbf16>
    %cst_21 = arith.constant dense<0.000000e+00> : vector<8x1024xf32>
    %23 = tpu.matmul %21, %22, %cst_21 {dimension_numbers = #tpu.dot_dimension_numbers<[1], [0], [0], [1], [0, 0, 1, 1], [], []>} : vector<8x384xbf16>, vector<384x1024xbf16>, vector<8x1024xf32> -> vector<8x1024xf32>
    %c0_22 = arith.constant 0 : index
    %c0_23 = arith.constant 0 : index
    %24 = vector.load %arg7[%c0_22, %c0_23] : memref<1x1024xf32, #tpu.memory_space<vmem>>, vector<1x1024xf32>
    %25 = vector.broadcast %24 : vector<1x1024xf32> to vector<8x1024xf32>
    %26 = arith.addf %23, %25 : vector<8x1024xf32>
    %cst_24 = arith.constant 0.000000e+00 : f32
    %27 = vector.broadcast %cst_24 : f32 to vector<8x1024xf32>
    %28 = arith.subf %27, %26 : vector<8x1024xf32>
    %29 = math.exp %28 : vector<8x1024xf32>
    %cst_25 = arith.constant 1.000000e+00 : f32
    %30 = vector.broadcast %cst_25 : f32 to vector<8x1024xf32>
    %31 = arith.addf %30, %29 : vector<8x1024xf32>
    %32 = tpu.reciprocal %31 {approx = true} : vector<8x1024xf32> -> vector<8x1024xf32>
    %33 = arith.truncf %32 : vector<8x1024xf32> to vector<8x1024xbf16>
    %c0_26 = arith.constant 0 : index
    %c0_27 = arith.constant 0 : index
    %34 = vector.load %arg8[%c0_26, %c0_27] : memref<8x1024xbf16, #tpu.memory_space<vmem>>, vector<8x1024xbf16>
    tpu.vector_store %arg8[%c0_26, %c0_27], %33 {strides = array<i32>} : memref<8x1024xbf16, #tpu.memory_space<vmem>>, vector<8x1024xbf16>,
    return
  }
  func.func @transform_0(%arg0: i32) -> (i32, i32) {
    %c0_i32 = arith.constant 0 : i32
    %c0_i32_0 = arith.constant 0 : i32
    return %arg0, %c0_i32 : i32, i32
  }
  func.func @transform_1(%arg0: i32) -> (i32, i32) {
    %c0_i32 = arith.constant 0 : i32
    %c0_i32_0 = arith.constant 0 : i32
    %c0_i32_1 = arith.constant 0 : i32
    return %c0_i32, %c0_i32_0 : i32, i32
  }
  func.func @transform_2(%arg0: i32) -> (i32, i32) {
    %c0_i32 = arith.constant 0 : i32
    %c0_i32_0 = arith.constant 0 : i32
    %c0_i32_1 = arith.constant 0 : i32
    return %c0_i32, %c0_i32_0 : i32, i32
  }
  func.func @transform_3(%arg0: i32) -> (i32, i32) {
    %c0_i32 = arith.constant 0 : i32
    %c0_i32_0 = arith.constant 0 : i32
    %c0_i32_1 = arith.constant 0 : i32
    return %c0_i32, %c0_i32_0 : i32, i32
  }
  func.func @transform_4(%arg0: i32) -> (i32, i32) {
    %c0_i32 = arith.constant 0 : i32
    %c0_i32_0 = arith.constant 0 : i32
    %c0_i32_1 = arith.constant 0 : i32
    return %c0_i32, %c0_i32_0 : i32, i32
  }
  func.func @transform_5(%arg0: i32) -> (i32, i32) {
    %c0_i32 = arith.constant 0 : i32
    %c0_i32_0 = arith.constant 0 : i32
    %c0_i32_1 = arith.constant 0 : i32
    return %c0_i32, %c0_i32_0 : i32, i32
  }
  func.func @transform_6(%arg0: i32) -> (i32, i32) {
    %c0_i32 = arith.constant 0 : i32
    %c0_i32_0 = arith.constant 0 : i32
    %c0_i32_1 = arith.constant 0 : i32
    return %c0_i32, %c0_i32_0 : i32, i32
  }
  func.func @transform_7(%arg0: i32) -> (i32, i32) {
    %c0_i32 = arith.constant 0 : i32
    %c0_i32_0 = arith.constant 0 : i32
    return %arg0, %c0_i32 : i32, i32
  }
}

</mosaic_0001>

<bundles_post_ra>
// kernel: decoder_forward.1
= control target key start
LH: loop header
LB: loop body
LE: loop exit
PB: predicated region body
PF: predicated region fallthrough
CT: control target
= control target key end

     0   :  { %v2402_v0 = vmov 0.0   ;;  %vm2403_vm0 = vmmov 0   ;;  %v2404_v2 = vmov 0   ;;  %vm30_vm1 = vcmask 158720   ;;  %s3215_s1 = inlined_call_operand.vmem [shape: bf16[128,128], index: 1, kind: input, shape index: {}]   ;;  %s3216_s0 = inlined_call_operand.vmem [shape: f32[8,20], index: 0, kind: input, shape index: {}]   ;;  %s3217_s3 = inlined_call_operand.vmem [shape: bf16[128,384], index: 3, kind: input, shape index: {}]   ;;  %s3218_s5 = inlined_call_operand.vmem [shape: bf16[384,1024], index: 5, kind: input, shape index: {}]   ;;  %s3219_s2 = inlined_call_operand.vmem [shape: f32[1,128], index: 2, kind: input, shape index: {}]   ;;  %s3220_s4 = inlined_call_operand.vmem [shape: f32[1,384], index: 4, kind: input, shape index: {}]   ;;  %s3221_s6 = inlined_call_operand.vmem [shape: f32[1,1024], index: 6, kind: input, shape index: {}]   ;;  %s3222_s7 = inlined_call_operand.vmem [shape: bf16[8,1024], index: 7, kind: output, shape index: {}]  }
   0x1   :  { %2263 = vmatprep.subr.bf16.mxu0 %v2402_v0  ;;  %v2330_v1 = vld [vmem:[%s3215_s1] sm:$0xff]   ;;  %2279 = vmatprep.mubr.msk.bf16.mxu0 %vm2403_vm0, %v2402_v0  ;;  %27 = vst [vmem:[#allocation2] sm:$0xf] %v2404_v2  ;;  %v2331_v3 = vld [vmem:[%s3215_s1 + $0x8] sm:$0xff]   ;;  %v2332_v4 = vld [vmem:[%s3215_s1 + $0x10] sm:$0xff]  }
   0x2   :  { %355 = vmatprep.mubr.bf16.mxu1 %v2404_v2  ;;  %2264 = vmatpush3.bf16.msra.mxu0 %v2330_v1  ;;  %v28_v5 = vld [vmem:[%s3216_s0] sm:$0xff]  ;;  %v2333_v9 = vld [vmem:[%s3215_s1 + $0x18] sm:$0xff]   ;;  %v2335_v16 = vld [vmem:[%s3215_s1 + $0x28] sm:$0xff]  }
   0x3   :  { %2265 = vmatprep.subr.bf16.mxu0 %v2402_v0  ;;  %v29_v6 = vpack.c.bf16 %v28_v5, %v28_v5  ;;  %v2338_v7 = vld [vmem:[%s3217_s3 + $0x4] ss:$12 sps:$4 sm:$0xff]   ;;  %v2340_v8 = vld [vmem:[%s3217_s3] ss:$12 sps:$4 sm:$0xff]   ;;  %v2342_v10 = vld [vmem:[%s3217_s3 + $0x1c] ss:$12 sps:$4 sm:$0xff]  }
   0x4   :  { %323 = vmatprep.subr.bf16.mxu1 %v2338_v7  ;;  %v2344_v11 = vld [vmem:[%s3217_s3 + $0x18] ss:$12 sps:$4 sm:$0xff]   ;;  %v2346_v12 = vld [vmem:[%s3217_s3 + $0x34] ss:$12 sps:$4 sm:$0xff]   ;;  %v2348_v14 = vld [vmem:[%s3217_s3 + $0x30] ss:$12 sps:$4 sm:$0xff]  }
   0x5   :  { %31 = vst.msk [vmem:[#allocation2] sm:$0xf] %vm30_vm1, %v29_v6  ;;  %324 = vmatpush1.bf16.msra.mxu1 %v2340_v8  ;;  %v2334_v13 = vld [vmem:[%s3215_s1 + $0x20] sm:$0xff]   ;;  %v2350_v15 = vld [vmem:[%s3217_s3 + $0x4c] ss:$12 sps:$4 sm:$0xff]   ;;  %v2336_v19 = vld [vmem:[%s3215_s1 + $0x30] sm:$0xff]  }
   0x6   :  { %2266 = vmatpush3.bf16.msra.mxu0 %v2331_v3  ;;  %325 = vmatprep.subr.bf16.mxu1 %v2342_v10  ;;  %v2352_v17 = vld [vmem:[%s3217_s3 + $0x48] ss:$12 sps:$4 sm:$0xff]   ;;  %v2354_v18 = vld [vmem:[%s3217_s3 + $0x64] ss:$12 sps:$4 sm:$0xff]   ;;  %v2356_v20 = vld [vmem:[%s3217_s3 + $0x60] ss:$12 sps:$4 sm:$0xff]  }
   0x7   :  { %2267 = vmatprep.subr.bf16.mxu0 %v2402_v0  ;;  %v2358_v21 = vld [vmem:[%s3217_s3 + $0x7c] ss:$12 sps:$4 sm:$0xff]   ;;  %v2360_v23 = vld [vmem:[%s3217_s3 + $0x78] ss:$12 sps:$4 sm:$0xff]   ;;  %v2362_v24 = vld [vmem:[%s3217_s3 + $0x94] ss:$12 sps:$4 sm:$0xff]  }
   0x8   :  { %v2337_v22 = vld [vmem:[%s3215_s1 + $0x38] sm:$0xff]   ;;  %v2341_v26 = vld [vmem:[%s3217_s3 + $0x8] ss:$12 sps:$4 sm:$0xff]   ;;  %v2345_v27 = vld [vmem:[%s3217_s3 + $0x20] ss:$12 sps:$4 sm:$0xff]  }
   0x9   :  { %326 = vmatpush1.bf16.msra.mxu1 %v2344_v11  ;;  %v2349_v28 = vld [vmem:[%s3217_s3 + $0x38] ss:$12 sps:$4 sm:$0xff]   ;;  %v2353_v29 = vld [vmem:[%s3217_s3 + $0x50] ss:$12 sps:$4 sm:$0xff]   ;;  %v2357_v30 = vld [vmem:[%s3217_s3 + $0x68] ss:$12 sps:$4 sm:$0xff]  }
   0xa   :  { %2268 = vmatpush3.bf16.msra.mxu0 %v2332_v4  ;;  %327 = vmatprep.subr.bf16.mxu1 %v2346_v12  ;;  %v2361_v31 = vld [vmem:[%s3217_s3 + $0x80] ss:$12 sps:$4 sm:$0xff]   ;;  %v2364_v32 = vld [vmem:[%s3217_s3 + $0x90] ss:$12 sps:$4 sm:$0xff]   ;;  %v2365_v33 = vld [vmem:[%s3217_s3 + $0x98] ss:$12 sps:$4 sm:$0xff]  }
   0xb   :  { %2269 = vmatprep.subr.bf16.mxu0 %v2402_v0  ;;  %v2366_v34 = vld [vmem:[%s3217_s3 + $0xac] ss:$12 sps:$4 sm:$0xff]   ;;  %v2368_v35 = vld [vmem:[%s3217_s3 + $0xa8] ss:$12 sps:$4 sm:$0xff]   ;;  %v2369_v36 = vld [vmem:[%s3217_s3 + $0xb0] ss:$12 sps:$4 sm:$0xff]  }
   0xc   :  { %v32_v25 = vld [vmem:[#allocation2] sm:$0xf]  ;;  %v411_v39 = vld [vmem:[%s3218_s5 + $0x8] sm:$0xff] }
   0xd   :  { %328 = vmatpush1.bf16.msra.mxu1 %v2348_v14  ;;  %v410_v37 = vld [vmem:[%s3218_s5] sm:$0xff]  ;;  %v415_v42 = vld [vmem:[%s3218_s5 + $0x28] sm:$0xff] }
   0xe   :  { %2270 = vmatpush3.bf16.msra.mxu0 %v2333_v9  ;;  %329 = vmatprep.subr.bf16.mxu1 %v2350_v15  ;;  %v414_v38 = vld [vmem:[%s3218_s5 + $0x20] sm:$0xff]  ;;  %v2047_v43 = vcombine.low %v411_v39, %v415_v42  ;;  %v2048_v44 = vcombine.high %v411_v39, %v415_v42  ;;  %v419_v52 = vld [vmem:[%s3218_s5 + $0x48] sm:$0xff] }
   0xf   :  { %2271 = vmatprep.subr.bf16.mxu0 %v2402_v0  ;;  %v2045_v40 = vcombine.low %v410_v37, %v414_v38  ;;  %v2046_v41 = vcombine.high %v410_v37, %v414_v38  ;;  %v2012_v45 = vld [vmem:[%s3219_s2] ss:$0 sm:$0xff]  ;;  %v423_v53 = vld [vmem:[%s3218_s5 + $0x68] sm:$0xff] }
  0x10   :  { %v418_v49 = vld [vmem:[%s3218_s5 + $0x40] sm:$0xff]  ;;  %v2056_v58 = vcombine.high %v419_v52, %v423_v53  ;;  %v427_v61 = vld [vmem:[%s3218_s5 + $0x88] sm:$0xff] }
  0x11   :  { %330 = vmatpush1.bf16.msra.mxu1 %v2352_v17  ;;  %v422_v51 = vld [vmem:[%s3218_s5 + $0x60] sm:$0xff]  ;;  %v431_v62 = vld [vmem:[%s3218_s5 + $0xa8] sm:$0xff] }
  0x12   :  { %2272 = vmatpush3.bf16.msra.mxu0 %v2334_v13  ;;  %331 = vmatprep.subr.bf16.mxu1 %v2354_v18  ;;  %v2054_v57 = vcombine.high %v418_v49, %v422_v51  ;;  %v426_v59 = vld [vmem:[%s3218_s5 + $0x80] sm:$0xff]  ;;  %v2053_v63 = vcombine.low %v418_v49, %v422_v51  ;;  %v2064_v3 = vcombine.high %v427_v61, %v431_v62  ;;  %v435_v6 = vld [vmem:[%s3218_s5 + $0xc8] sm:$0xff] }
  0x13   :  { %2273 = vmatprep.subr.bf16.mxu0 %v2402_v0  ;;  %v430_v60 = vld [vmem:[%s3218_s5 + $0xa0] sm:$0xff]  ;;  %v439_v7 = vld [vmem:[%s3218_s5 + $0xe8] sm:$0xff]  ;;  %v2063_v9 = vcombine.low %v427_v61, %v431_v62 }
  0x14   :  { %v2062_v1 = vcombine.high %v426_v59, %v430_v60  ;;  %v434_v4 = vld [vmem:[%s3218_s5 + $0xc0] sm:$0xff]  ;;  %v2061_v8 = vcombine.low %v426_v59, %v430_v60  ;;  %v2072_v11 = vcombine.high %v435_v6, %v439_v7  ;;  %v443_v14 = vld [vmem:[%s3218_s5 + $0x108] sm:$0xff]  ;;  %v2071_v17 = vcombine.low %v435_v6, %v439_v7 }
  0x15   :  { %332 = vmatpush1.bf16.msra.mxu1 %v2356_v20  ;;  %v438_v5 = vld [vmem:[%s3218_s5 + $0xe0] sm:$0xff]  ;;  %v447_v15 = vld [vmem:[%s3218_s5 + $0x128] sm:$0xff] }
  0x16   :  { %2274 = vmatpush3.bf16.msra.mxu0 %v2335_v16  ;;  %333 = vmatprep.subr.bf16.mxu1 %v2358_v21  ;;  %v2070_v10 = vcombine.high %v434_v4, %v438_v5  ;;  %v442_v12 = vld [vmem:[%s3218_s5 + $0x100] sm:$0xff]  ;;  %v2069_v16 = vcombine.low %v434_v4, %v438_v5  ;;  %v467_v38 = vld [vmem:[%s3218_s5 + $0x1c8] sm:$0xff] }
  0x17   :  { %2275 = vmatprep.subr.bf16.mxu0 %v2402_v0  ;;  %v446_v13 = vld [vmem:[%s3218_s5 + $0x120] sm:$0xff]  ;;  %v471_v39 = vld [vmem:[%s3218_s5 + $0x1e8] sm:$0xff] }
  0x18   :  { %v2078_v18 = vcombine.high %v442_v12, %v446_v13  ;;  %v450_v20 = vld [vmem:[%s3218_s5 + $0x140] sm:$0xff]  ;;  %v2103_v49 = vcombine.low %v467_v38, %v471_v39  ;;  %v491_v62 = vld [vmem:[%s3218_s5 + $0x288] sm:$0xff] }
  0x19   :  { %334 = vmatpush1.bf16.msra.mxu1 %v2360_v23  ;;  %v454_v21 = vld [vmem:[%s3218_s5 + $0x160] sm:$0xff]  ;;  %v455_v23 = vld [vmem:[%s3218_s5 + $0x168] sm:$0xff] }
  0x1a   :  { %2276 = vmatpush3.bf16.msra.mxu0 %v2336_v19  ;;  %335 = vmatprep.subr.bf16.mxu1 %v2362_v24  ;;  %v2080_v19 = vcombine.high %v443_v14, %v447_v15  ;;  %v2077_v24 = vcombine.low %v442_v12, %v446_v13  ;;  %v470_v37 = vld [vmem:[%s3218_s5 + $0x1e0] sm:$0xff]  ;;  %v499_v7 = vld [vmem:[%s3218_s5 + $0x2c8] sm:$0xff] }
  0x1b   :  { %2277 = vmatprep.subr.bf16.mxu0 %v2402_v0  ;;  %v490_v60 = vld [vmem:[%s3218_s5 + $0x280] sm:$0xff] }
  0x1c   :  { %v494_v61 = vld [vmem:[%s3218_s5 + $0x2a0] sm:$0xff] }
  0x1d   :  { %336 = vmatpush1.bf16.msra.mxu1 %v2364_v32  ;;  %v2085_v32 = vcombine.low %v450_v20, %v454_v21  ;;  %v498_v5 = vld [vmem:[%s3218_s5 + $0x2c0] sm:$0xff] }
  0x1e   :  { %2278 = vmatpush3.bf16.msra.mxu0 %v2337_v22  ;;  %337 = vmatprep.subr.bf16.mxu1 %v2366_v34  ;;  %v451_v22 = vld [vmem:[%s3218_s5 + $0x148] sm:$0xff]  ;;  %v502_v6 = vld [vmem:[%s3218_s5 + $0x2e0] sm:$0xff] }
  0x1f   :  { %2283 = vmatprep.subr.bf16.mxu0 %v2402_v0  ;;  %v506_v13 = vld [vmem:[%s3218_s5 + $0x300] sm:$0xff] }
  0x21   :  { %2280 = vmatmul.mubr.bf16.vlgmr.msra.gmra.mrb[0].mxu0 %v32_v25  ;;  %338 = vmatpush1.bf16.msra.mxu1 %v2368_v35  ;;  %v2079_v25 = vcombine.low %v443_v14, %v447_v15  ;;  %v510_v14 = vld [vmem:[%s3218_s5 + $0x320] sm:$0xff]  ;;  %v507_v15 = vld [vmem:[%s3218_s5 + $0x308] sm:$0xff] }
  0x22   :  { %2284 = vmatpush3.bf16.msra.mxu0 %v2341_v26  ;;  %2299 = vmatprep.mubr.msk.bf16.mxu0 %vm2403_vm0, %v2402_v0  ;;  %v2086_v26 = vcombine.high %v450_v20, %v454_v21  ;;  %v514_v21 = vld [vmem:[%s3218_s5 + $0x340] sm:$0xff] }
  0x23   :  { %2285 = vmatprep.subr.bf16.mxu0 %v2402_v0  ;;  %1604 = vmatprep.subr.bf16.mxu1 %v2046_v41 }
  0x26   :  { %2286 = vmatpush3.bf16.msra.mxu0 %v2345_v27  ;;  %v2088_v27 = vcombine.high %v451_v22, %v455_v23 }
  0x27   :  { %2287 = vmatprep.subr.bf16.mxu0 %v2402_v0 }
  0x2a   :  { %2288 = vmatpush3.bf16.msra.mxu0 %v2349_v28  ;;  %v458_v28 = vld [vmem:[%s3218_s5 + $0x180] sm:$0xff] }
  0x2b   :  { %2289 = vmatprep.subr.bf16.mxu0 %v2402_v0 }
  0x2e   :  { %2290 = vmatpush3.bf16.msra.mxu0 %v2353_v29  ;;  %v462_v29 = vld [vmem:[%s3218_s5 + $0x1a0] sm:$0xff] }
  0x2f   :  { %2291 = vmatprep.subr.bf16.mxu0 %v2402_v0  ;;  %v2094_v34 = vcombine.high %v458_v28, %v462_v29 }
  0x32   :  { %2292 = vmatpush3.bf16.msra.mxu0 %v2357_v30  ;;  %v459_v30 = vld [vmem:[%s3218_s5 + $0x188] sm:$0xff] }
  0x33   :  { %2293 = vmatprep.subr.bf16.mxu0 %v2402_v0 }
  0x36   :  { %2294 = vmatpush3.bf16.msra.mxu0 %v2361_v31  ;;  %v463_v31 = vld [vmem:[%s3218_s5 + $0x1a8] sm:$0xff] }
  0x37   :  { %2295 = vmatprep.subr.bf16.mxu0 %v2402_v0  ;;  %v2096_v35 = vcombine.high %v459_v30, %v463_v31  ;;  %v2095_v41 = vcombine.low %v459_v30, %v463_v31  ;;  %v522_v31 = vld [vmem:[%s3218_s5 + $0x380] sm:$0xff] }
  0x3a   :  { %2296 = vmatpush3.bf16.msra.mxu0 %v2365_v33  ;;  %v2087_v33 = vcombine.low %v451_v22, %v455_v23  ;;  %v518_v22 = vld [vmem:[%s3218_s5 + $0x360] sm:$0xff]  ;;  %v515_v23 = vld [vmem:[%s3218_s5 + $0x348] sm:$0xff] }
  0x3b   :  { %2297 = vmatprep.subr.bf16.mxu0 %v2402_v0  ;;  %v2055_v0 = vcombine.low %v419_v52, %v423_v53  ;;  %v482_v52 = vld [vmem:[%s3218_s5 + $0x240] sm:$0xff] }
  0x3c   :  { %v486_v53 = vld [vmem:[%s3218_s5 + $0x260] sm:$0xff] }
  0x3e   :  { %2298 = vmatpush3.bf16.msra.mxu0 %v2369_v36  ;;  %v466_v36 = vld [vmem:[%s3218_s5 + $0x1c0] sm:$0xff] }
  0x3f   :  { %1686 = vmatprep.subr.bf16.mxu0 %v2048_v44  ;;  %v2102_v42 = vcombine.high %v466_v36, %v470_v37  ;;  %v474_v44 = vld [vmem:[%s3218_s5 + $0x200] sm:$0xff] }
  0xf4   :  { %v138_v46 = vpop.f32.mrb[0].mxu0 }
  0xf5   :  { %v139_v47 = vadd.f32 %v2012_v45, %v138_v46  ;;  %v2281_v48 = vpop.f32.mrb[1].mxu0  ;;  %v478_v45 = vld [vmem:[%s3218_s5 + $0x220] sm:$0xff]  ;;  %v475_v46 = vld [vmem:[%s3218_s5 + $0x208] sm:$0xff] }
  0xf6   :  { %v141_v50 = vpop.f32.mrb[2].mxu0  ;;  %v2101_v48 = vcombine.low %v466_v36, %v470_v37 }
  0xf7   :  { %v144_v54 = vmax.f32 %v139_v47, 0.0  ;;  %v2282_v55 = vpop.f32.mrb[3].mxu0  ;;  %v479_v47 = vld [vmem:[%s3218_s5 + $0x228] sm:$0xff]  ;;  %v2110_v50 = vcombine.high %v474_v44, %v478_v45 }
  0xf8   :  { %v2112_v51 = vcombine.high %v475_v46, %v479_v47  ;;  %v487_v55 = vld [vmem:[%s3218_s5 + $0x268] sm:$0xff] }
  0xf9   :  { %v145_v56 = vpack.c.bf16 %v144_v54, %v144_v54  ;;  %v483_v54 = vld [vmem:[%s3218_s5 + $0x248] sm:$0xff] }
  0xfa   :  { %v2120_v59 = vcombine.high %v483_v54, %v487_v55 }
  0xfb   :  { %356 = vmatmul.mubr.bf16.vlgmr.msra.gmra.mrb[0].mxu1 %v145_v56  ;;  %2300 = vmatmul.mubr.bf16.vlgmr.msra.gmra.mrb[4].mxu0 %v145_v56  ;;  %v2109_v56 = vcombine.low %v474_v44, %v478_v45 }
  0xfc   :  { %1605 = vmatpush1.bf16.msra.mxu1 %v2045_v40  ;;  %1687 = vmatpush1.bf16.msra.mxu0 %v2047_v43  ;;  %v2093_v40 = vcombine.low %v458_v28, %v462_v29  ;;  %v2104_v43 = vcombine.high %v467_v38, %v471_v39  ;;  %v2149_v29 = vcombine.low %v514_v21, %v518_v22  ;;  %v530_v39 = vld [vmem:[%s3218_s5 + $0x3c0] sm:$0xff] }
  0xfd   :  { %1606 = vmatprep.subr.bf16.mxu1 %v2054_v57  ;;  %1688 = vmatprep.subr.bf16.mxu0 %v2056_v58  ;;  %v2111_v57 = vcombine.low %v475_v46, %v479_v47  ;;  %v2118_v58 = vcombine.high %v482_v52, %v486_v53  ;;  %v538_v47 = vld [vmem:[%s3218_s5 + $0x400] sm:$0xff] }
 0x100   :  { %1607 = vmatpush1.bf16.msra.mxu1 %v2053_v63  ;;  %1689 = vmatpush1.bf16.msra.mxu0 %v2055_v0  ;;  %v495_v63 = vld [vmem:[%s3218_s5 + $0x2a8] sm:$0xff]  ;;  %v2117_v0 = vcombine.low %v482_v52, %v486_v53 }
 0x101   :  { %1608 = vmatprep.subr.bf16.mxu1 %v2062_v1  ;;  %1690 = vmatprep.subr.bf16.mxu0 %v2064_v3  ;;  %v2119_v1 = vcombine.low %v483_v54, %v487_v55  ;;  %v2126_v3 = vcombine.high %v490_v60, %v494_v61  ;;  %v2128_v4 = vcombine.high %v491_v62, %v495_v63  ;;  %v180_v55 = vlaneseq }
 0x104   :  { %1609 = vmatpush1.bf16.msra.mxu1 %v2061_v8  ;;  %1691 = vmatpush1.bf16.msra.mxu0 %v2063_v9  ;;  %v503_v8 = vld [vmem:[%s3218_s5 + $0x2e8] sm:$0xff]  ;;  %v2125_v9 = vcombine.low %v490_v60, %v494_v61 }
 0x105   :  { %1610 = vmatprep.subr.bf16.mxu1 %v2070_v10  ;;  %1692 = vmatprep.subr.bf16.mxu0 %v2072_v11  ;;  %v2127_v10 = vcombine.low %v491_v62, %v495_v63  ;;  %v2134_v11 = vcombine.high %v498_v5, %v502_v6  ;;  %v2136_v12 = vcombine.high %v499_v7, %v503_v8 }
 0x108   :  { %1611 = vmatpush1.bf16.msra.mxu1 %v2069_v16  ;;  %1693 = vmatpush1.bf16.msra.mxu0 %v2071_v17  ;;  %v511_v16 = vld [vmem:[%s3218_s5 + $0x328] sm:$0xff]  ;;  %v2133_v17 = vcombine.low %v498_v5, %v502_v6 }
 0x109   :  { %1612 = vmatprep.subr.bf16.mxu1 %v2078_v18  ;;  %1694 = vmatprep.subr.bf16.mxu0 %v2080_v19  ;;  %v2135_v18 = vcombine.low %v499_v7, %v503_v8  ;;  %v2142_v19 = vcombine.high %v506_v13, %v510_v14  ;;  %v2144_v20 = vcombine.high %v507_v15, %v511_v16 }
 0x10c   :  { %1613 = vmatpush1.bf16.msra.mxu1 %v2077_v24  ;;  %1695 = vmatpush1.bf16.msra.mxu0 %v2079_v25  ;;  %v519_v24 = vld [vmem:[%s3218_s5 + $0x368] sm:$0xff]  ;;  %v2141_v25 = vcombine.low %v506_v13, %v510_v14 }
 0x10d   :  { %1614 = vmatprep.subr.bf16.mxu1 %v2086_v26  ;;  %1696 = vmatprep.subr.bf16.mxu0 %v2088_v27  ;;  %v2143_v26 = vcombine.low %v507_v15, %v511_v16  ;;  %v2150_v27 = vcombine.high %v514_v21, %v518_v22  ;;  %v2152_v28 = vcombine.high %v515_v23, %v519_v24  ;;  %v547_v13 = vld [vmem:[%s3218_s5 + $0x448] sm:$0xff] }
 0x10e   :  { %v2151_v30 = vcombine.low %v515_v23, %v519_v24  ;;  %v551_v14 = vld [vmem:[%s3218_s5 + $0x468] sm:$0xff] }
 0x10f   :  { %v555_v21 = vld [vmem:[%s3218_s5 + $0x488] sm:$0xff]  ;;  %v2183_v24 = vcombine.low %v547_v13, %v551_v14 }
 0x110   :  { %1615 = vmatpush1.bf16.msra.mxu1 %v2085_v32  ;;  %1697 = vmatpush1.bf16.msra.mxu0 %v2087_v33  ;;  %v526_v32 = vld [vmem:[%s3218_s5 + $0x3a0] sm:$0xff]  ;;  %v523_v33 = vld [vmem:[%s3218_s5 + $0x388] sm:$0xff] }
 0x111   :  { %1616 = vmatprep.subr.bf16.mxu1 %v2094_v34  ;;  %1698 = vmatprep.subr.bf16.mxu0 %v2096_v35  ;;  %v2158_v34 = vcombine.high %v522_v31, %v526_v32  ;;  %v527_v35 = vld [vmem:[%s3218_s5 + $0x3a8] sm:$0xff]  ;;  %v2157_v36 = vcombine.low %v522_v31, %v526_v32 }
 0x112   :  { %v2159_v37 = vcombine.low %v523_v33, %v527_v35  ;;  %v2160_v38 = vcombine.high %v523_v33, %v527_v35  ;;  %v559_v22 = vld [vmem:[%s3218_s5 + $0x4a8] sm:$0xff]  ;;  %v570_v35 = vld [vmem:[%s3218_s5 + $0x500] sm:$0xff] }
 0x113   :  { %v2191_v32 = vcombine.low %v555_v21, %v559_v22 }
 0x114   :  { %1617 = vmatpush1.bf16.msra.mxu1 %v2093_v40  ;;  %1699 = vmatpush1.bf16.msra.mxu0 %v2095_v41  ;;  %v534_v40 = vld [vmem:[%s3218_s5 + $0x3e0] sm:$0xff]  ;;  %v531_v41 = vld [vmem:[%s3218_s5 + $0x3c8] sm:$0xff] }
 0x115   :  { %1618 = vmatprep.subr.bf16.mxu1 %v2102_v42  ;;  %1700 = vmatprep.subr.bf16.mxu0 %v2104_v43  ;;  %v2166_v42 = vcombine.high %v530_v39, %v534_v40  ;;  %v535_v43 = vld [vmem:[%s3218_s5 + $0x3e8] sm:$0xff]  ;;  %v2165_v44 = vcombine.low %v530_v39, %v534_v40 }
 0x116   :  { %v2167_v45 = vcombine.low %v531_v41, %v535_v43  ;;  %v2168_v46 = vcombine.high %v531_v41, %v535_v43  ;;  %v578_v43 = vld [vmem:[%s3218_s5 + $0x540] sm:$0xff] }
 0x118   :  { %1619 = vmatpush1.bf16.msra.mxu1 %v2101_v48  ;;  %1701 = vmatpush1.bf16.msra.mxu0 %v2103_v49  ;;  %v542_v48 = vld [vmem:[%s3218_s5 + $0x420] sm:$0xff]  ;;  %v539_v49 = vld [vmem:[%s3218_s5 + $0x408] sm:$0xff] }
 0x119   :  { %1620 = vmatprep.subr.bf16.mxu1 %v2110_v50  ;;  %1702 = vmatprep.subr.bf16.mxu0 %v2112_v51  ;;  %v2174_v50 = vcombine.high %v538_v47, %v542_v48  ;;  %v543_v51 = vld [vmem:[%s3218_s5 + $0x428] sm:$0xff]  ;;  %v2173_v52 = vcombine.low %v538_v47, %v542_v48 }
 0x11a   :  { %v2175_v53 = vcombine.low %v539_v49, %v543_v51  ;;  %v2176_v54 = vcombine.high %v539_v49, %v543_v51 }
 0x11c   :  { %1621 = vmatpush1.bf16.msra.mxu1 %v2109_v56  ;;  %1703 = vmatpush1.bf16.msra.mxu0 %v2111_v57  ;;  %v2773_v56 = vshrl.u32 %v180_v55, 7  ;;  %v591_v55 = vld [vmem:[%s3218_s5 + $0x5a8] sm:$0xff] }
 0x11d   :  { %1622 = vmatprep.subr.bf16.mxu1 %v2118_v58  ;;  %1704 = vmatprep.subr.bf16.mxu0 %v2120_v59  ;;  %v2779_v58 = vld [vmem:[%s3220_s4] sm:$0x7] }
 0x11e   :  { %v182_v57 = vsub.s32 0, %v2773_v56  ;;  %v186_v59 = vsub.s32 1, %v2773_v56  ;;  %v190_v49 = vsub.s32 2, %v2773_v56 }
 0x120   :  { %1623 = vmatpush1.bf16.msra.mxu1 %v2117_v0  ;;  %1705 = vmatpush1.bf16.msra.mxu0 %v2119_v1  ;;  %v183_v60 = vrot.slane %v2779_v58, %v182_v57  ;;  %v187_v61 = vrot.slane %v2779_v58, %v186_v59 }
 0x121   :  { %1624 = vmatprep.subr.bf16.mxu1 %v2126_v3  ;;  %1706 = vmatprep.subr.bf16.mxu0 %v2128_v4 }
 0x124   :  { %1625 = vmatpush1.bf16.msra.mxu1 %v2125_v9  ;;  %1707 = vmatpush1.bf16.msra.mxu0 %v2127_v10  ;;  %v546_v10 = vld [vmem:[%s3218_s5 + $0x440] sm:$0xff] }
 0x125   :  { %1626 = vmatprep.subr.bf16.mxu1 %v2134_v11  ;;  %1708 = vmatprep.subr.bf16.mxu0 %v2136_v12  ;;  %v550_v12 = vld [vmem:[%s3218_s5 + $0x460] sm:$0xff] }
 0x126   :  { %v2181_v23 = vcombine.low %v546_v10, %v550_v12 }
 0x128   :  { %1627 = vmatpush1.bf16.msra.mxu1 %v2133_v17  ;;  %1709 = vmatpush1.bf16.msra.mxu0 %v2135_v18  ;;  %v2182_v17 = vcombine.high %v546_v10, %v550_v12  ;;  %v2184_v18 = vcombine.high %v547_v13, %v551_v14  ;;  %v416_v12 = vld [vmem:[%s3218_s5 + $0x30] sm:$0xff]  ;;  %v413_v13 = vld [vmem:[%s3218_s5 + $0x18] sm:$0xff] }
 0x129   :  { %1628 = vmatprep.subr.bf16.mxu1 %v2142_v19  ;;  %1710 = vmatprep.subr.bf16.mxu0 %v2144_v20  ;;  %v554_v19 = vld [vmem:[%s3218_s5 + $0x480] sm:$0xff] }
 0x12a   :  { %v558_v20 = vld [vmem:[%s3218_s5 + $0x4a0] sm:$0xff] }
 0x12b   :  { %v2189_v31 = vcombine.low %v554_v19, %v558_v20 }
 0x12c   :  { %1629 = vmatpush1.bf16.msra.mxu1 %v2141_v25  ;;  %1711 = vmatpush1.bf16.msra.mxu0 %v2143_v26  ;;  %v2190_v25 = vcombine.high %v554_v19, %v558_v20  ;;  %v2192_v26 = vcombine.high %v555_v21, %v559_v22  ;;  %v420_v21 = vld [vmem:[%s3218_s5 + $0x50] sm:$0xff] }
 0x12d   :  { %1630 = vmatprep.subr.bf16.mxu1 %v2150_v27  ;;  %1712 = vmatprep.subr.bf16.mxu0 %v2152_v28  ;;  %v562_v27 = vld [vmem:[%s3218_s5 + $0x4c0] sm:$0xff]  ;;  %v424_v22 = vld [vmem:[%s3218_s5 + $0x70] sm:$0xff] }
 0x12e   :  { %v566_v28 = vld [vmem:[%s3218_s5 + $0x4e0] sm:$0xff] }
 0x12f   :  { %v2198_v33 = vcombine.high %v562_v27, %v566_v28  ;;  %v2197_v39 = vcombine.low %v562_v27, %v566_v28  ;;  %v2058_v28 = vcombine.high %v420_v21, %v424_v22 }
 0x130   :  { %1631 = vmatpush1.bf16.msra.mxu1 %v2149_v29  ;;  %1713 = vmatpush1.bf16.msra.mxu0 %v2151_v30  ;;  %v563_v29 = vld [vmem:[%s3218_s5 + $0x4c8] sm:$0xff] }
 0x131   :  { %1632 = vmatprep.subr.bf16.mxu1 %v2158_v34  ;;  %1714 = vmatprep.subr.bf16.mxu0 %v2160_v38  ;;  %v567_v30 = vld [vmem:[%s3218_s5 + $0x4e8] sm:$0xff] }
 0x132   :  { %v2200_v34 = vcombine.high %v563_v29, %v567_v30  ;;  %v575_v38 = vld [vmem:[%s3218_s5 + $0x528] sm:$0xff]  ;;  %v2199_v40 = vcombine.low %v563_v29, %v567_v30  ;;  %v428_v30 = vld [vmem:[%s3218_s5 + $0x90] sm:$0xff] }
 0x134   :  { %1633 = vmatpush1.bf16.msra.mxu1 %v2157_v36  ;;  %1715 = vmatpush1.bf16.msra.mxu0 %v2159_v37  ;;  %v574_v36 = vld [vmem:[%s3218_s5 + $0x520] sm:$0xff]  ;;  %v571_v37 = vld [vmem:[%s3218_s5 + $0x508] sm:$0xff] }
 0x135   :  { %1634 = vmatprep.subr.bf16.mxu1 %v2166_v42  ;;  %1716 = vmatprep.subr.bf16.mxu0 %v2168_v46  ;;  %v2206_v41 = vcombine.high %v570_v35, %v574_v36  ;;  %v2208_v42 = vcombine.high %v571_v37, %v575_v38  ;;  %v583_v46 = vld [vmem:[%s3218_s5 + $0x568] sm:$0xff]  ;;  %v2205_v47 = vcombine.low %v570_v35, %v574_v36 }
 0x136   :  { %v2207_v48 = vcombine.low %v571_v37, %v575_v38  ;;  %v436_v38 = vld [vmem:[%s3218_s5 + $0xd0] sm:$0xff] }
 0x138   :  { %1635 = vmatpush1.bf16.msra.mxu1 %v2165_v44  ;;  %1717 = vmatpush1.bf16.msra.mxu0 %v2167_v45  ;;  %v582_v44 = vld [vmem:[%s3218_s5 + $0x560] sm:$0xff]  ;;  %v579_v45 = vld [vmem:[%s3218_s5 + $0x548] sm:$0xff] }
 0x139   :  { %1645 = vmatprep.subr.bf16.mxu1 %v2174_v50  ;;  %1727 = vmatprep.subr.bf16.mxu0 %v2176_v54  ;;  %v2214_v50 = vcombine.high %v578_v43, %v582_v44  ;;  %v2216_v51 = vcombine.high %v579_v45, %v583_v46  ;;  %v587_v54 = vld [vmem:[%s3218_s5 + $0x588] sm:$0xff] }
 0x1ce   :  { %v357_v62 = vpop.f32.mrb[0].mxu1  ;;  %v2788_v63 = vpop.f32.mrb[4].mxu0 }
 0x1cf   :  { %v358_v0 = vadd.f32 %v357_v62, %v183_v60  ;;  %v359_v1 = vpop.f32.mrb[1].mxu1  ;;  %v2301_v3 = vpop.f32.mrb[5].mxu0  ;;  %v2213_v60 = vcombine.low %v578_v43, %v582_v44  ;;  %v191_v62 = vrot.slane %v2779_v58, %v190_v49  ;;  %v599_v58 = vld [vmem:[%s3218_s5 + $0x5e8] sm:$0xff] }
 0x1d0   :  { %v360_v4 = vadd.f32 %v359_v1, %v187_v61  ;;  %v361_v5 = vpop.f32.mrb[2].mxu1  ;;  %v401_v6 = vpop.f32.mrb[6].mxu0  ;;  %v2215_v61 = vcombine.low %v579_v45, %v583_v46  ;;  %v2224_v1 = vcombine.high %v587_v54, %v591_v55  ;;  %v594_v3 = vld [vmem:[%s3218_s5 + $0x5c0] sm:$0xff]  ;;  %v444_v45 = vld [vmem:[%s3218_s5 + $0x110] sm:$0xff] }
 0x1d1   :  { %v404_v7 = vmax.f32 %v358_v0, 0.0  ;;  %v362_v8 = vpop.f32.mrb[3].mxu1  ;;  %v2302_v9 = vpop.f32.mrb[7].mxu0  ;;  %v595_v5 = vld [vmem:[%s3218_s5 + $0x5c8] sm:$0xff]  ;;  %v448_v46 = vld [vmem:[%s3218_s5 + $0x130] sm:$0xff] }
 0x1d2   :  { %v405_v11 = vmax.f32 %v360_v4, 0.0  ;;  %v598_v4 = vld [vmem:[%s3218_s5 + $0x5e0] sm:$0xff]  ;;  %v399_v8 = vadd.f32 %v2788_v63, %v191_v62  ;;  %v2232_v10 = vcombine.high %v595_v5, %v599_v58  ;;  %v417_v63 = vld [vmem:[%s3218_s5 + $0x38] sm:$0xff]  ;;  %v2081_v62 = vcombine.low %v444_v45, %v448_v46 }
 0x1d3   :  { %v2804_v16 = vpack.c.bf16 %v404_v7, %v404_v7  ;;  %v2223_v7 = vcombine.low %v587_v54, %v591_v55  ;;  %v2230_v9 = vcombine.high %v594_v3, %v598_v4  ;;  %v2229_v14 = vcombine.low %v594_v3, %v598_v4  ;;  %v452_v54 = vld [vmem:[%s3218_s5 + $0x150] sm:$0xff] }
 0x1d4   :  { %v2802_v15 = vpack.c.bf16 %v405_v11, %v405_v11  ;;  %v412_v11 = vld [vmem:[%s3218_s5 + $0x10] sm:$0xff]  ;;  %v2052_v20 = vcombine.high %v413_v13, %v417_v63  ;;  %v2051_v27 = vcombine.low %v413_v13, %v417_v63  ;;  %v469_v13 = vld [vmem:[%s3218_s5 + $0x1d8] sm:$0xff] }
 0x1d5   :  { %v2050_v19 = vcombine.high %v412_v11, %v416_v12  ;;  %v456_v55 = vld [vmem:[%s3218_s5 + $0x170] sm:$0xff]  ;;  %v473_v63 = vld [vmem:[%s3218_s5 + $0x1f8] sm:$0xff] }
 0x1d6   :  { %1636 = vmatprep.mubr.bf16.mxu1 %v2802_v15  ;;  %1718 = vmatprep.mubr.bf16.mxu0 %v2802_v15  ;;  %v460_v4 = vld [vmem:[%s3218_s5 + $0x190] sm:$0xff] }
 0x1d7   :  { %1637 = vmatmul.mubr.bf16.vlgmr.msra.gmra.mrb[4].mxu1 %v2804_v16  ;;  %1719 = vmatmul.mubr.bf16.vlgmr.msra.gmra.mrb[8].mxu0 %v2804_v16 }
 0x1d8   :  { %1646 = vmatpush1.bf16.msra.mxu1 %v2173_v52  ;;  %1728 = vmatpush1.bf16.msra.mxu0 %v2175_v53  ;;  %v586_v52 = vld [vmem:[%s3218_s5 + $0x580] sm:$0xff] }
 0x1d9   :  { %1647 = vmatprep.subr.bf16.mxu1 %v2182_v17  ;;  %1729 = vmatprep.subr.bf16.mxu0 %v2184_v18  ;;  %v590_v53 = vld [vmem:[%s3218_s5 + $0x5a0] sm:$0xff]  ;;  %v2231_v17 = vcombine.low %v595_v5, %v599_v58  ;;  %v406_v18 = vmax.f32 %v399_v8, 0.0  ;;  %v464_v5 = vld [vmem:[%s3218_s5 + $0x1b0] sm:$0xff]  ;;  %v461_v58 = vld [vmem:[%s3218_s5 + $0x198] sm:$0xff] }
 0x1da   :  { %1677 = vmatprep.mubr.bf16.mxu1 %v2404_v2  ;;  %1759 = vmatprep.mubr.bf16.mxu0 %v2404_v2  ;;  %v2222_v0 = vcombine.high %v586_v52, %v590_v53  ;;  %v2221_v6 = vcombine.low %v586_v52, %v590_v53  ;;  %v2082_v52 = vcombine.high %v444_v45, %v448_v46  ;;  %v504_v45 = vld [vmem:[%s3218_s5 + $0x2f0] sm:$0xff]  ;;  %v501_v46 = vld [vmem:[%s3218_s5 + $0x2d8] sm:$0xff] }
 0x1dc   :  { %1648 = vmatpush1.bf16.msra.mxu1 %v2181_v23  ;;  %1730 = vmatpush1.bf16.msra.mxu0 %v2183_v24  ;;  %v421_v23 = vld [vmem:[%s3218_s5 + $0x58] sm:$0xff] }
 0x1dd   :  { %1649 = vmatprep.subr.bf16.mxu1 %v2190_v25  ;;  %1731 = vmatprep.subr.bf16.mxu0 %v2192_v26  ;;  %v425_v24 = vld [vmem:[%s3218_s5 + $0x78] sm:$0xff]  ;;  %v2049_v25 = vcombine.low %v412_v11, %v416_v12  ;;  %v2913_v26 = vpack.c.bf16 %v406_v18, %v406_v18  ;;  %v468_v11 = vld [vmem:[%s3218_s5 + $0x1d0] sm:$0xff] }
 0x1de   :  { %v2060_v29 = vcombine.high %v421_v23, %v425_v24  ;;  %v2059_v35 = vcombine.low %v421_v23, %v425_v24  ;;  %v472_v12 = vld [vmem:[%s3218_s5 + $0x1f0] sm:$0xff]  ;;  %v481_v23 = vld [vmem:[%s3218_s5 + $0x238] sm:$0xff] }
 0x1df   :  { %v2106_v18 = vcombine.high %v468_v11, %v472_v12  ;;  %v2105_v24 = vcombine.low %v468_v11, %v472_v12  ;;  %v528_v11 = vld [vmem:[%s3218_s5 + $0x3b0] sm:$0xff]  ;;  %v525_v12 = vld [vmem:[%s3218_s5 + $0x398] sm:$0xff] }
 0x1e0   :  { %1650 = vmatpush1.bf16.msra.mxu1 %v2189_v31  ;;  %1732 = vmatpush1.bf16.msra.mxu0 %v2191_v32  ;;  %v432_v31 = vld [vmem:[%s3218_s5 + $0xb0] sm:$0xff]  ;;  %v429_v32 = vld [vmem:[%s3218_s5 + $0x98] sm:$0xff] }
 0x1e1   :  { %1651 = vmatprep.subr.bf16.mxu1 %v2198_v33  ;;  %1733 = vmatprep.subr.bf16.mxu0 %v2200_v34  ;;  %v433_v33 = vld [vmem:[%s3218_s5 + $0xb8] sm:$0xff]  ;;  %v2057_v34 = vcombine.low %v420_v21, %v424_v22  ;;  %v2066_v36 = vcombine.high %v428_v30, %v432_v31  ;;  %v480_v21 = vld [vmem:[%s3218_s5 + $0x230] sm:$0xff] }
 0x1e2   :  { %v2068_v37 = vcombine.high %v429_v32, %v433_v33  ;;  %v477_v22 = vld [vmem:[%s3218_s5 + $0x218] sm:$0xff] }
 0x1e4   :  { %1652 = vmatpush1.bf16.msra.mxu1 %v2197_v39  ;;  %1734 = vmatpush1.bf16.msra.mxu0 %v2199_v40  ;;  %v440_v39 = vld [vmem:[%s3218_s5 + $0xf0] sm:$0xff]  ;;  %v437_v40 = vld [vmem:[%s3218_s5 + $0xd8] sm:$0xff] }
 0x1e5   :  { %1653 = vmatprep.subr.bf16.mxu1 %v2206_v41  ;;  %1735 = vmatprep.subr.bf16.mxu0 %v2208_v42  ;;  %v2065_v41 = vcombine.low %v428_v30, %v432_v31  ;;  %v2067_v42 = vcombine.low %v429_v32, %v433_v33  ;;  %v2074_v43 = vcombine.high %v436_v38, %v440_v39  ;;  %v488_v30 = vld [vmem:[%s3218_s5 + $0x270] sm:$0xff]  ;;  %v485_v31 = vld [vmem:[%s3218_s5 + $0x258] sm:$0xff] }
 0x1e6   :  { %v489_v32 = vld [vmem:[%s3218_s5 + $0x278] sm:$0xff] }
 0x1e8   :  { %1654 = vmatpush1.bf16.msra.mxu1 %v2205_v47  ;;  %1736 = vmatpush1.bf16.msra.mxu0 %v2207_v48  ;;  %v445_v47 = vld [vmem:[%s3218_s5 + $0x118] sm:$0xff] }
 0x1e9   :  { %1655 = vmatprep.subr.bf16.mxu1 %v2214_v50  ;;  %1737 = vmatprep.subr.bf16.mxu0 %v2216_v51  ;;  %v449_v48 = vld [vmem:[%s3218_s5 + $0x138] sm:$0xff]  ;;  %v2073_v50 = vcombine.low %v436_v38, %v440_v39  ;;  %v496_v38 = vld [vmem:[%s3218_s5 + $0x2b0] sm:$0xff] }
 0x1ea   :  { %v2084_v53 = vcombine.high %v445_v47, %v449_v48  ;;  %v493_v39 = vld [vmem:[%s3218_s5 + $0x298] sm:$0xff] }
 0x1ec   :  { %1656 = vmatpush1.bf16.msra.mxu1 %v2213_v60  ;;  %1738 = vmatpush1.bf16.msra.mxu0 %v2215_v61  ;;  %v453_v60 = vld [vmem:[%s3218_s5 + $0x158] sm:$0xff] }
 0x1ed   :  { %1657 = vmatprep.subr.bf16.mxu1 %v2222_v0  ;;  %1739 = vmatprep.subr.bf16.mxu0 %v2224_v1  ;;  %v457_v61 = vld [vmem:[%s3218_s5 + $0x178] sm:$0xff]  ;;  %v2083_v0 = vcombine.low %v445_v47, %v449_v48  ;;  %v2090_v1 = vcombine.high %v452_v54, %v456_v55 }
 0x1ee   :  { %v2092_v3 = vcombine.high %v453_v60, %v457_v61  ;;  %v2091_v8 = vcombine.low %v453_v60, %v457_v61  ;;  %v505_v47 = vld [vmem:[%s3218_s5 + $0x2f8] sm:$0xff] }
 0x1ef   :  { %v513_v60 = vld [vmem:[%s3218_s5 + $0x338] sm:$0xff] }
 0x1f0   :  { %1658 = vmatpush1.bf16.msra.mxu1 %v2221_v6  ;;  %1740 = vmatpush1.bf16.msra.mxu0 %v2223_v7  ;;  %v465_v6 = vld [vmem:[%s3218_s5 + $0x1b8] sm:$0xff]  ;;  %v2089_v7 = vcombine.low %v452_v54, %v456_v55  ;;  %v512_v54 = vld [vmem:[%s3218_s5 + $0x330] sm:$0xff] }
 0x1f1   :  { %1659 = vmatprep.subr.bf16.mxu1 %v2230_v9  ;;  %1741 = vmatprep.subr.bf16.mxu0 %v2232_v10  ;;  %v2098_v9 = vcombine.high %v460_v4, %v464_v5  ;;  %v2100_v10 = vcombine.high %v461_v58, %v465_v6  ;;  %v509_v55 = vld [vmem:[%s3218_s5 + $0x318] sm:$0xff] }
 0x1f4   :  { %1660 = vmatpush1.bf16.msra.mxu1 %v2229_v14  ;;  %1742 = vmatpush1.bf16.msra.mxu0 %v2231_v17  ;;  %v2097_v14 = vcombine.low %v460_v4, %v464_v5  ;;  %v2099_v17 = vcombine.low %v461_v58, %v465_v6  ;;  %v520_v4 = vld [vmem:[%s3218_s5 + $0x370] sm:$0xff]  ;;  %v517_v5 = vld [vmem:[%s3218_s5 + $0x358] sm:$0xff] }
 0x1f5   :  { %1768 = vmatprep.subr.bf16.mxu1 %v2050_v19  ;;  %1850 = vmatprep.subr.bf16.mxu0 %v2052_v20  ;;  %v2108_v19 = vcombine.high %v469_v13, %v473_v63  ;;  %v476_v20 = vld [vmem:[%s3218_s5 + $0x210] sm:$0xff]  ;;  %v521_v58 = vld [vmem:[%s3218_s5 + $0x378] sm:$0xff] }
 0x1f6   :  { %v2113_v33 = vcombine.low %v476_v20, %v480_v21 }
 0x1f7   :  { %1678 = vmatmul.mubr.bf16.vlgmr.msra.gmra.mrb[4].mxu1 %v2913_v26  ;;  %1760 = vmatmul.mubr.bf16.vlgmr.msra.gmra.mrb[8].mxu0 %v2913_v26 }
 0x1f8   :  { %1769 = vmatpush1.bf16.msra.mxu1 %v2049_v25  ;;  %1800 = vmatprep.mubr.bf16.mxu1 %v2802_v15  ;;  %v2107_v25 = vcombine.low %v469_v13, %v473_v63  ;;  %v529_v13 = vld [vmem:[%s3218_s5 + $0x3b8] sm:$0xff] }
 0x1f9   :  { %1851 = vmatpush1.bf16.msra.mxu0 %v2051_v27  ;;  %1882 = vmatprep.mubr.bf16.mxu0 %v2802_v15  ;;  %v441_v15 = vld [vmem:[%s3218_s5 + $0xf8] sm:$0xff]  ;;  %v2114_v27 = vcombine.high %v476_v20, %v480_v21  ;;  %v536_v20 = vld [vmem:[%s3218_s5 + $0x3f0] sm:$0xff] }
 0x1fa   :  { %1770 = vmatprep.subr.bf16.mxu1 %v2058_v28  ;;  %1852 = vmatprep.subr.bf16.mxu0 %v2060_v29  ;;  %v2076_v44 = vcombine.high %v437_v40, %v441_v15  ;;  %v2075_v51 = vcombine.low %v437_v40, %v441_v15  ;;  %v2116_v28 = vcombine.high %v477_v22, %v481_v23  ;;  %v484_v29 = vld [vmem:[%s3218_s5 + $0x250] sm:$0xff]  ;;  %v497_v40 = vld [vmem:[%s3218_s5 + $0x2b8] sm:$0xff] }
 0x1fb   :  { %v2121_v15 = vcombine.low %v484_v29, %v488_v30  ;;  %v533_v21 = vld [vmem:[%s3218_s5 + $0x3d8] sm:$0xff] }
 0x1fc   :  { %1771 = vmatpush1.bf16.msra.mxu1 %v2057_v34  ;;  %v2115_v34 = vcombine.low %v477_v22, %v481_v23  ;;  %v537_v22 = vld [vmem:[%s3218_s5 + $0x3f8] sm:$0xff] }
 0x1fd   :  { %1853 = vmatpush1.bf16.msra.mxu0 %v2059_v35  ;;  %1772 = vmatprep.subr.bf16.mxu1 %v2066_v36  ;;  %v2122_v35 = vcombine.high %v484_v29, %v488_v30  ;;  %v2124_v36 = vcombine.high %v485_v31, %v489_v32  ;;  %v544_v29 = vld [vmem:[%s3218_s5 + $0x430] sm:$0xff]  ;;  %v541_v30 = vld [vmem:[%s3218_s5 + $0x418] sm:$0xff] }
 0x1fe   :  { %1854 = vmatprep.subr.bf16.mxu0 %v2068_v37  ;;  %v492_v37 = vld [vmem:[%s3218_s5 + $0x290] sm:$0xff] }
 0x1ff   :  { %v2129_v48 = vcombine.low %v492_v37, %v496_v38 }
 0x200   :  { %1773 = vmatpush1.bf16.msra.mxu1 %v2065_v41  ;;  %v2123_v41 = vcombine.low %v485_v31, %v489_v32  ;;  %v545_v31 = vld [vmem:[%s3218_s5 + $0x438] sm:$0xff] }
 0x201   :  { %1855 = vmatpush1.bf16.msra.mxu0 %v2067_v42  ;;  %1774 = vmatprep.subr.bf16.mxu1 %v2074_v43  ;;  %v2130_v42 = vcombine.high %v492_v37, %v496_v38  ;;  %v2132_v43 = vcombine.high %v493_v39, %v497_v40  ;;  %v552_v37 = vld [vmem:[%s3218_s5 + $0x470] sm:$0xff]  ;;  %v549_v38 = vld [vmem:[%s3218_s5 + $0x458] sm:$0xff] }
 0x202   :  { %1856 = vmatprep.subr.bf16.mxu0 %v2076_v44  ;;  %v500_v44 = vld [vmem:[%s3218_s5 + $0x2d0] sm:$0xff] }
 0x203   :  { %v2137_v61 = vcombine.low %v500_v44, %v504_v45 }
 0x204   :  { %1775 = vmatpush1.bf16.msra.mxu1 %v2073_v50  ;;  %v2131_v50 = vcombine.low %v493_v39, %v497_v40  ;;  %v553_v39 = vld [vmem:[%s3218_s5 + $0x478] sm:$0xff] }
 0x205   :  { %1857 = vmatpush1.bf16.msra.mxu0 %v2075_v51  ;;  %1776 = vmatprep.subr.bf16.mxu1 %v2082_v52  ;;  %v2138_v51 = vcombine.high %v500_v44, %v504_v45  ;;  %v2140_v52 = vcombine.high %v501_v46, %v505_v47  ;;  %v560_v44 = vld [vmem:[%s3218_s5 + $0x4b0] sm:$0xff]  ;;  %v557_v45 = vld [vmem:[%s3218_s5 + $0x498] sm:$0xff] }
 0x206   :  { %1858 = vmatprep.subr.bf16.mxu0 %v2084_v53  ;;  %v508_v53 = vld [vmem:[%s3218_s5 + $0x310] sm:$0xff] }
 0x207   :  { %v2145_v6 = vcombine.low %v508_v53, %v512_v54 }
 0x208   :  { %1777 = vmatpush1.bf16.msra.mxu1 %v2081_v62  ;;  %v2139_v62 = vcombine.low %v501_v46, %v505_v47  ;;  %v561_v46 = vld [vmem:[%s3218_s5 + $0x4b8] sm:$0xff] }
 0x209   :  { %1859 = vmatpush1.bf16.msra.mxu0 %v2083_v0  ;;  %1778 = vmatprep.subr.bf16.mxu1 %v2090_v1  ;;  %v2146_v0 = vcombine.high %v508_v53, %v512_v54  ;;  %v2148_v1 = vcombine.high %v509_v55, %v513_v60  ;;  %v568_v53 = vld [vmem:[%s3218_s5 + $0x4f0] sm:$0xff]  ;;  %v569_v54 = vld [vmem:[%s3218_s5 + $0x4f8] sm:$0xff] }
 0x20a   :  { %1860 = vmatprep.subr.bf16.mxu0 %v2092_v3  ;;  %v516_v3 = vld [vmem:[%s3218_s5 + $0x350] sm:$0xff] }
 0x20b   :  { %v2153_v63 = vcombine.low %v516_v3, %v520_v4 }
 0x20c   :  { %1779 = vmatpush1.bf16.msra.mxu1 %v2089_v7  ;;  %v2147_v7 = vcombine.low %v509_v55, %v513_v60  ;;  %v2195_v60 = vcombine.low %v557_v45, %v561_v46 }
 0x20d   :  { %1861 = vmatpush1.bf16.msra.mxu0 %v2091_v8  ;;  %1780 = vmatprep.subr.bf16.mxu1 %v2098_v9  ;;  %v2154_v8 = vcombine.high %v516_v3, %v520_v4  ;;  %v2156_v9 = vcombine.high %v517_v5, %v521_v58  ;;  %v577_v3 = vld [vmem:[%s3218_s5 + $0x538] sm:$0xff] }
 0x20e   :  { %1862 = vmatprep.subr.bf16.mxu0 %v2100_v10  ;;  %v524_v10 = vld [vmem:[%s3218_s5 + $0x390] sm:$0xff] }
 0x20f   :  { %v2161_v23 = vcombine.low %v524_v10, %v528_v11 }
 0x210   :  { %1781 = vmatpush1.bf16.msra.mxu1 %v2097_v14  ;;  %v2155_v14 = vcombine.low %v517_v5, %v521_v58 }
 0x211   :  { %1863 = vmatpush1.bf16.msra.mxu0 %v2099_v17  ;;  %1782 = vmatprep.subr.bf16.mxu1 %v2106_v18  ;;  %v2162_v17 = vcombine.high %v524_v10, %v528_v11  ;;  %v2164_v18 = vcombine.high %v525_v12, %v529_v13  ;;  %v585_v10 = vld [vmem:[%s3218_s5 + $0x578] sm:$0xff] }
 0x212   :  { %1864 = vmatprep.subr.bf16.mxu0 %v2108_v19  ;;  %v532_v19 = vld [vmem:[%s3218_s5 + $0x3d0] sm:$0xff] }
 0x213   :  { %v2169_v32 = vcombine.low %v532_v19, %v536_v20 }
 0x214   :  { %1783 = vmatpush1.bf16.msra.mxu1 %v2105_v24  ;;  %v2163_v24 = vcombine.low %v525_v12, %v529_v13 }
 0x215   :  { %1865 = vmatpush1.bf16.msra.mxu0 %v2107_v25  ;;  %1784 = vmatprep.subr.bf16.mxu1 %v2114_v27  ;;  %v2170_v25 = vcombine.high %v532_v19, %v536_v20  ;;  %v2172_v27 = vcombine.high %v533_v21, %v537_v22  ;;  %v593_v19 = vld [vmem:[%s3218_s5 + $0x5b8] sm:$0xff] }
 0x216   :  { %1866 = vmatprep.subr.bf16.mxu0 %v2116_v28  ;;  %v540_v28 = vld [vmem:[%s3218_s5 + $0x410] sm:$0xff] }
 0x217   :  { %v2177_v40 = vcombine.low %v540_v28, %v544_v29 }
 0x218   :  { %1785 = vmatpush1.bf16.msra.mxu1 %v2113_v33  ;;  %v2171_v33 = vcombine.low %v533_v21, %v537_v22 }
 0x219   :  { %1867 = vmatpush1.bf16.msra.mxu0 %v2115_v34  ;;  %1786 = vmatprep.subr.bf16.mxu1 %v2122_v35  ;;  %v2178_v34 = vcombine.high %v540_v28, %v544_v29  ;;  %v2180_v35 = vcombine.high %v541_v30, %v545_v31  ;;  %v601_v28 = vld [vmem:[%s3218_s5 + $0x5f8] sm:$0xff] }
 0x21a   :  { %1868 = vmatprep.subr.bf16.mxu0 %v2124_v36  ;;  %v548_v36 = vld [vmem:[%s3218_s5 + $0x450] sm:$0xff] }
 0x21b   :  { %v2185_v47 = vcombine.low %v548_v36, %v552_v37 }
 0x21c   :  { %1787 = vmatpush1.bf16.msra.mxu1 %v2121_v15  ;;  %v2179_v15 = vcombine.low %v541_v30, %v545_v31 }
 0x21d   :  { %1869 = vmatpush1.bf16.msra.mxu0 %v2123_v41  ;;  %1788 = vmatprep.subr.bf16.mxu1 %v2130_v42  ;;  %v2186_v41 = vcombine.high %v548_v36, %v552_v37  ;;  %v2188_v42 = vcombine.high %v549_v38, %v553_v39  ;;  %v618_v36 = vsub.s32 3, %v2773_v56 }
 0x21e   :  { %1870 = vmatprep.subr.bf16.mxu0 %v2132_v43  ;;  %v556_v43 = vld [vmem:[%s3218_s5 + $0x490] sm:$0xff] }
 0x21f   :  { %v2193_v55 = vcombine.low %v556_v43, %v560_v44 }
 0x220   :  { %1789 = vmatpush1.bf16.msra.mxu1 %v2129_v48  ;;  %v2187_v48 = vcombine.low %v549_v38, %v553_v39 }
 0x221   :  { %1871 = vmatpush1.bf16.msra.mxu0 %v2131_v50  ;;  %1790 = vmatprep.subr.bf16.mxu1 %v2138_v51  ;;  %v2194_v50 = vcombine.high %v556_v43, %v560_v44  ;;  %v2196_v51 = vcombine.high %v557_v45, %v561_v46 }
 0x222   :  { %1872 = vmatprep.subr.bf16.mxu0 %v2140_v52  ;;  %v564_v52 = vld [vmem:[%s3218_s5 + $0x4d0] sm:$0xff] }
 0x223   :  { %v2201_v4 = vcombine.low %v564_v52, %v568_v53 }
 0x224   :  { %1791 = vmatpush1.bf16.msra.mxu1 %v2137_v61  ;;  %v2202_v61 = vcombine.high %v564_v52, %v568_v53 }
 0x225   :  { %1873 = vmatpush1.bf16.msra.mxu0 %v2139_v62  ;;  %1792 = vmatprep.subr.bf16.mxu1 %v2146_v0  ;;  %v572_v0 = vld [vmem:[%s3218_s5 + $0x510] sm:$0xff] }
 0x226   :  { %1874 = vmatprep.subr.bf16.mxu0 %v2148_v1  ;;  %v576_v1 = vld [vmem:[%s3218_s5 + $0x530] sm:$0xff] }
 0x227   :  { %v2210_v58 = vcombine.high %v572_v0, %v576_v1  ;;  %v2209_v11 = vcombine.low %v572_v0, %v576_v1 }
 0x228   :  { %1793 = vmatpush1.bf16.msra.mxu1 %v2145_v6 }
 0x229   :  { %1875 = vmatpush1.bf16.msra.mxu0 %v2147_v7  ;;  %1794 = vmatprep.subr.bf16.mxu1 %v2154_v8  ;;  %v580_v7 = vld [vmem:[%s3218_s5 + $0x550] sm:$0xff] }
 0x22a   :  { %1876 = vmatprep.subr.bf16.mxu0 %v2156_v9  ;;  %v584_v8 = vld [vmem:[%s3218_s5 + $0x570] sm:$0xff]  ;;  %v581_v9 = vld [vmem:[%s3218_s5 + $0x558] sm:$0xff] }
 0x22b   :  { %v2218_v13 = vcombine.high %v580_v7, %v584_v8  ;;  %v2217_v20 = vcombine.low %v580_v7, %v584_v8  ;;  %v2219_v21 = vcombine.low %v581_v9, %v585_v10 }
 0x22c   :  { %1795 = vmatpush1.bf16.msra.mxu1 %v2153_v63  ;;  %v2220_v63 = vcombine.high %v581_v9, %v585_v10  ;;  %v622_v10 = vsub.s32 4, %v2773_v56 }
 0x22d   :  { %1877 = vmatpush1.bf16.msra.mxu0 %v2155_v14  ;;  %1796 = vmatprep.subr.bf16.mxu1 %v2162_v17  ;;  %v588_v14 = vld [vmem:[%s3218_s5 + $0x590] sm:$0xff] }
 0x22e   :  { %1878 = vmatprep.subr.bf16.mxu0 %v2164_v18  ;;  %v592_v17 = vld [vmem:[%s3218_s5 + $0x5b0] sm:$0xff]  ;;  %v589_v18 = vld [vmem:[%s3218_s5 + $0x598] sm:$0xff] }
 0x22f   :  { %v2226_v22 = vcombine.high %v588_v14, %v592_v17  ;;  %v2225_v29 = vcombine.low %v588_v14, %v592_v17  ;;  %v2227_v30 = vcombine.low %v589_v18, %v593_v19 }
 0x230   :  { %1797 = vmatpush1.bf16.msra.mxu1 %v2161_v23  ;;  %v2228_v23 = vcombine.high %v589_v18, %v593_v19 }
 0x231   :  { %1879 = vmatpush1.bf16.msra.mxu0 %v2163_v24  ;;  %1798 = vmatprep.subr.bf16.mxu1 %v2170_v25  ;;  %v596_v24 = vld [vmem:[%s3218_s5 + $0x5d0] sm:$0xff] }
 0x232   :  { %1880 = vmatprep.subr.bf16.mxu0 %v2172_v27  ;;  %v600_v25 = vld [vmem:[%s3218_s5 + $0x5f0] sm:$0xff]  ;;  %v597_v27 = vld [vmem:[%s3218_s5 + $0x5d8] sm:$0xff] }
 0x233   :  { %v2234_v31 = vcombine.high %v596_v24, %v600_v25 }
 0x234   :  { %1799 = vmatpush1.bf16.msra.mxu1 %v2169_v32  ;;  %v2236_v32 = vcombine.high %v597_v27, %v601_v28 }
 0x235   :  { %1881 = vmatpush1.bf16.msra.mxu0 %v2171_v33  ;;  %1809 = vmatprep.subr.bf16.mxu1 %v2178_v34  ;;  %v2233_v33 = vcombine.low %v596_v24, %v600_v25  ;;  %v2235_v34 = vcombine.low %v597_v27, %v601_v28 }
 0x236   :  { %1891 = vmatprep.subr.bf16.mxu0 %v2180_v35  ;;  %v602_v35 = vld [vmem:[%s3221_s6] sm:$0xff] }
 0x237   :  { %1801 = vmatmul.mubr.bf16.vlgmr.msra.gmra.mrb[8].mxu1 %v2804_v16  ;;  %v607_v37 = vrot.slane %v602_v35, %v182_v57  ;;  %v615_v38 = vrot.slane %v602_v35, %v190_v49  ;;  %v611_v39 = vrot.slane %v602_v35, %v186_v59 }
 0x238   :  { %1883 = vmatmul.mubr.bf16.vlgmr.msra.gmra.mrb[12].mxu0 %v2804_v16  ;;  %1810 = vmatpush1.bf16.msra.mxu1 %v2177_v40  ;;  %v565_v16 = vld [vmem:[%s3218_s5 + $0x4d8] sm:$0xff]  ;;  %v619_v40 = vrot.slane %v602_v35, %v618_v36 }
 0x239   :  { %1892 = vmatpush1.bf16.msra.mxu0 %v2179_v15  ;;  %1811 = vmatprep.subr.bf16.mxu1 %v2186_v41  ;;  %v2204_v62 = vcombine.high %v565_v16, %v569_v54  ;;  %v2203_v5 = vcombine.low %v565_v16, %v569_v54 }
 0x23a   :  { %1893 = vmatprep.subr.bf16.mxu0 %v2188_v42  ;;  %1841 = vmatprep.mubr.bf16.mxu1 %v2404_v2 }
 0x23b   :  { %1923 = vmatprep.mubr.bf16.mxu0 %v2404_v2  ;;  %v573_v2 = vld [vmem:[%s3218_s5 + $0x518] sm:$0xff] }
 0x23c   :  { %1812 = vmatpush1.bf16.msra.mxu1 %v2185_v47  ;;  %v2212_v6 = vcombine.high %v573_v2, %v577_v3  ;;  %v2211_v12 = vcombine.low %v573_v2, %v577_v3 }
 0x23d   :  { %1894 = vmatpush1.bf16.msra.mxu0 %v2187_v48  ;;  %1813 = vmatprep.subr.bf16.mxu1 %v2194_v50 }
 0x23e   :  { %1895 = vmatprep.subr.bf16.mxu0 %v2196_v51 }
 0x240   :  { %1814 = vmatpush1.bf16.msra.mxu1 %v2193_v55 }
 0x241   :  { %1896 = vmatpush1.bf16.msra.mxu0 %v2195_v60  ;;  %1815 = vmatprep.subr.bf16.mxu1 %v2202_v61 }
 0x242   :  { %1897 = vmatprep.subr.bf16.mxu0 %v2204_v62 }
 0x244   :  { %1816 = vmatpush1.bf16.msra.mxu1 %v2201_v4 }
 0x245   :  { %1898 = vmatpush1.bf16.msra.mxu0 %v2203_v5  ;;  %1817 = vmatprep.subr.bf16.mxu1 %v2210_v58 }
 0x246   :  { %1899 = vmatprep.subr.bf16.mxu0 %v2212_v6 }
 0x248   :  { %1818 = vmatpush1.bf16.msra.mxu1 %v2209_v11  ;;  %v630_v11 = vsub.s32 6, %v2773_v56 }
 0x249   :  { %1900 = vmatpush1.bf16.msra.mxu0 %v2211_v12  ;;  %1819 = vmatprep.subr.bf16.mxu1 %v2218_v13  ;;  %v626_v12 = vsub.s32 5, %v2773_v56  ;;  %v634_v13 = vsub.s32 7, %v2773_v56 }
 0x24a   :  { %1901 = vmatprep.subr.bf16.mxu0 %v2220_v63  ;;  %v623_v63 = vrot.slane %v602_v35, %v622_v10  ;;  %v631_v14 = vrot.slane %v602_v35, %v630_v11 }
 0x24b   :  { %v627_v17 = vrot.slane %v602_v35, %v626_v12  ;;  %v635_v18 = vrot.slane %v602_v35, %v634_v13 }
 0x24c   :  { %1820 = vmatpush1.bf16.msra.mxu1 %v2217_v20 }
 0x24d   :  { %1902 = vmatpush1.bf16.msra.mxu0 %v2219_v21  ;;  %1821 = vmatprep.subr.bf16.mxu1 %v2226_v22 }
 0x24e   :  { %1903 = vmatprep.subr.bf16.mxu0 %v2228_v23 }
 0x250   :  { %1822 = vmatpush1.bf16.msra.mxu1 %v2225_v29 }
 0x251   :  { %1904 = vmatpush1.bf16.msra.mxu0 %v2227_v30  ;;  %1823 = vmatprep.subr.bf16.mxu1 %v2234_v31 }
 0x252   :  { %1905 = vmatprep.subr.bf16.mxu0 %v2236_v32 }
 0x254   :  { %1824 = vmatpush1.bf16.msra.mxu1 %v2233_v33 }
 0x255   :  { %1906 = vmatpush1.bf16.msra.mxu0 %v2235_v34 }
 0x257   :  { %1842 = vmatmul.mubr.bf16.vlgmr.msra.gmra.mrb[8].mxu1 %v2913_v26 }
 0x258   :  { %1924 = vmatmul.mubr.bf16.vlgmr.msra.gmra.mrb[12].mxu0 %v2913_v26 }
 0x2ca   :  { %v1679_v15 = vpop.f32.mrb[4].mxu1  ;;  %v1761_v41 = vpop.f32.mrb[8].mxu0 }
 0x2cb   :  { %v2303_v42 = vadd.f32 %v1679_v15, %v607_v37  ;;  %v2305_v26 = vadd.f32 %v1761_v41, %v615_v38  ;;  %v1681_v43 = vpop.f32.mrb[5].mxu1  ;;  %v1763_v44 = vpop.f32.mrb[9].mxu0 }
 0x2cc   :  { %v2304_v45 = vadd.f32 %v1681_v43, %v611_v39  ;;  %v2306_v46 = vadd.f32 %v1763_v44, %v619_v40  ;;  %v1683_v47 = vpop.f32.mrb[6].mxu1  ;;  %v1765_v48 = vpop.f32.mrb[10].mxu0 }
 0x2cd   :  { %v1932_v50 = vsub.f32 0.0, %v2303_v42  ;;  %v1934_v51 = vsub.f32 0.0, %v2305_v26  ;;  %v1684_v57 = vpop.f32.mrb[7].mxu1  ;;  %v1766_v52 = vpop.f32.mrb[11].mxu0 }
 0x2ce   :  { %v1933_v53 = vsub.f32 0.0, %v2304_v45  ;;  %v1935_v49 = vsub.f32 0.0, %v2306_v46 }
 0x2cf   :  { %v1940_v16 = vmul.f32 1.442695, %v1932_v50  ;;  %v1944_v54 = vmul.f32 1.442695, %v1934_v51 }
 0x2d0   :  { %v1942_v59 = vmul.f32 1.442695, %v1933_v53  ;;  %v1946_v55 = vmul.f32 1.442695, %v1935_v49 }
 0x2d1   :  { %2370 = vpow2.f32 %v1940_v16 }
 0x2d2   :  { %2372 = vpow2.f32 %v1944_v54 }
 0x2d3   :  { %2374 = vpow2.f32 %v1942_v59 }
 0x2d4   :  { %2376 = vpow2.f32 %v1946_v55 }
 0x2db   :  { %v2371_v60 = vpop.eup %2370 }
 0x2dc   :  { %v2373_v61 = vpop.eup %2372  ;;  %v1956_v62 = vadd.f32 1.0, %v2371_v60 }
 0x2dd   :  { %v2375_v0 = vpop.eup %2374  ;;  %v1958_v1 = vadd.f32 1.0, %v2373_v61 }
 0x2de   :  { %v2377_v2 = vpop.eup %2376  ;;  %2378 = vrcp.f32 %v1956_v62  ;;  %v1957_v3 = vadd.f32 1.0, %v2375_v0 }
 0x2df   :  { %2380 = vrcp.f32 %v1958_v1  ;;  %v1959_v4 = vadd.f32 1.0, %v2377_v2 }
 0x2e0   :  { %2382 = vrcp.f32 %v1957_v3 }
 0x2e1   :  { %2384 = vrcp.f32 %v1959_v4 }
 0x2e8   :  { %v2379_v5 = vpop.eup %2378 }
 0x2e9   :  { %v2381_v58 = vpop.eup %2380 }
 0x2ea   :  { %v2383_v6 = vpop.eup %2382 }
 0x2eb   :  { %v2385_v7 = vpop.eup %2384  ;;  %v2241_v8 = vpack.c.bf16 %v2383_v6, %v2379_v5 }
 0x2ec   :  { %v2242_v9 = vpack.c.bf16 %v2385_v7, %v2381_v58 }
 0x2ed   :  { %2004 = vst [vmem:[%s3222_s7] sm:$0xff] %v2241_v8 }
 0x2ee   :  { %2005 = vst [vmem:[%s3222_s7 + $0x8] sm:$0xff] %v2242_v9 }
 0x32a   :  { %v1843_v19 = vpop.f32.mrb[8].mxu1 }
 0x32b   :  { %v2307_v20 = vadd.f32 %v1843_v19, %v623_v63  ;;  %v1925_v21 = vpop.f32.mrb[12].mxu0  ;;  %v1845_v22 = vpop.f32.mrb[9].mxu1 }
 0x32c   :  { %v2309_v23 = vadd.f32 %v1925_v21, %v631_v14  ;;  %v2308_v24 = vadd.f32 %v1845_v22, %v627_v17  ;;  %v1927_v25 = vpop.f32.mrb[13].mxu0  ;;  %v1847_v27 = vpop.f32.mrb[10].mxu1 }
 0x32d   :  { %v1936_v28 = vsub.f32 0.0, %v2307_v20  ;;  %v2310_v29 = vadd.f32 %v1927_v25, %v635_v18  ;;  %v1929_v30 = vpop.f32.mrb[14].mxu0  ;;  %v1848_v31 = vpop.f32.mrb[11].mxu1 }
 0x32e   :  { %v1938_v32 = vsub.f32 0.0, %v2309_v23  ;;  %v1937_v33 = vsub.f32 0.0, %v2308_v24  ;;  %v1930_v34 = vpop.f32.mrb[15].mxu0 }
 0x32f   :  { %v1948_v56 = vmul.f32 1.442695, %v1936_v28  ;;  %v1939_v36 = vsub.f32 0.0, %v2310_v29 }
 0x330   :  { %v1952_v37 = vmul.f32 1.442695, %v1938_v32  ;;  %v1950_v38 = vmul.f32 1.442695, %v1937_v33 }
 0x331   :  { %2386 = vpow2.f32 %v1948_v56  ;;  %v1954_v35 = vmul.f32 1.442695, %v1939_v36 }
 0x332   :  { %2388 = vpow2.f32 %v1952_v37 }
 0x333   :  { %2390 = vpow2.f32 %v1950_v38 }
 0x334   :  { %2392 = vpow2.f32 %v1954_v35 }
 0x33b   :  { %v2387_v39 = vpop.eup %2386 }
 0x33c   :  { %v2389_v40 = vpop.eup %2388  ;;  %v1960_v15 = vadd.f32 1.0, %v2387_v39 }
 0x33d   :  { %v2391_v41 = vpop.eup %2390  ;;  %v1962_v42 = vadd.f32 1.0, %v2389_v40 }
 0x33e   :  { %v2393_v26 = vpop.eup %2392  ;;  %2394 = vrcp.f32 %v1960_v15  ;;  %v1961_v43 = vadd.f32 1.0, %v2391_v41 }
 0x33f   :  { %2396 = vrcp.f32 %v1962_v42  ;;  %v1963_v44 = vadd.f32 1.0, %v2393_v26 }
 0x340   :  { %2398 = vrcp.f32 %v1961_v43 }
 0x341   :  { %2400 = vrcp.f32 %v1963_v44 }
 0x348   :  { %v2395_v45 = vpop.eup %2394 }
 0x349   :  { %v2397_v46 = vpop.eup %2396 }
 0x34a   :  { %v2399_v47 = vpop.eup %2398 }
 0x34b   :  { %v2401_v48 = vpop.eup %2400  ;;  %v2243_v50 = vpack.c.bf16 %v2399_v47, %v2395_v45 }
 0x34c   :  { %v2244_v51 = vpack.c.bf16 %v2401_v48, %v2397_v46 }
 0x34d   :  { %2006 = vst [vmem:[%s3222_s7 + $0x10] sm:$0xff] %v2243_v50 }
 0x34e   :  { %2007 = vst [vmem:[%s3222_s7 + $0x18] sm:$0xff] %v2244_v51 }

</bundles_post_ra>
